<compile_context>
chip_gen: v6e
topology: v6e:2x2x1
jax: 0.10.0
libtpu: 0.0.40
codegen_flags: <defaults>
</compile_context>

<pallas_src>
import functools

import jax
import jax.numpy as jnp
from jax.experimental import pallas as pl
from jax.experimental.pallas import tpu as pltpu


def _moco_kernel(q_ref, k_ref, queue_ref,           # inputs  (VMEM blocks)
                 logits_ref, loss_ref,               # outputs (VMEM blocks)
                 m_s, s_s, pos_s, carry_s,           # VMEM scratch, (TN, 1) f32
                 *, temperature: float, tk: int, num_k_tiles: int):
    j = pl.program_id(1)                             # K-tile index (innermost)
    inv_t = jnp.float32(1.0 / temperature)

    # ---- MXU matmul: bf16 operands, f32 accumulation, 1/T scale on the VPU.
    q = q_ref[...]                                                    # (TN, C)
    neg = jnp.dot(q, queue_ref[...],
                  preferred_element_type=jnp.float32) * inv_t         # (TN, TK) f32

    # ---- First K tile: positive logit + init of the online-logsumexp state.
    @pl.when(j == 0)
    def _():
        pos = jnp.sum(q.astype(jnp.float32) * k_ref[...].astype(jnp.float32),
                      axis=1, keepdims=True) * inv_t                  # (TN, 1)
        pos_s[...] = pos
        carry_s[...] = pos            # becomes logits column 0 below
        m_s[...] = pos                # running max seeded with the positive
        s_s[...] = jnp.ones_like(pos)  # exp(pos - pos) == 1 contribution

    # ---- Shift-by-one store into the resident logits row slab.
    # Global layout: logits[:, 0] = pos, logits[:, 1 + r] = neg[:, r].
    # The aligned slab region [j*tk, (j+1)*tk) therefore holds
    # [carry | neg[:, :tk-1]] where carry is the previous tile's last column
    # (or pos for j == 0).  All stores stay lane-aligned (offset multiple of tk).
    first_col = carry_s[...]                                           # (TN, 1)
    tile = jnp.concatenate([first_col, neg[:, : tk - 1]], axis=1)      # (TN, TK)
    col0 = pl.multiple_of(j * tk, tk)
    logits_ref[:, pl.ds(col0, tk)] = tile.astype(logits_ref.dtype)
    carry_s[...] = neg[:, tk - 1: tk]          # carried into the next K tile

    # ---- Streaming logsumexp update with this neg tile (all f32).
    # TODO(synk): for v7x (EUP-bound once HBM traffic shrinks) the m/s/pos state
    # could be held lane-major (1, TN) to cut the per-step rescale exp work.
    m_old = m_s[...]                                                   # (TN, 1)
    m_new = jnp.maximum(m_old, jnp.max(neg, axis=1, keepdims=True))
    s_s[...] = s_s[...] * jnp.exp(m_old - m_new) + jnp.sum(
        jnp.exp(neg - m_new), axis=1, keepdims=True)
    m_s[...] = m_new

    # ---- Last K tile: finish the logits row and emit a per-tile loss partial.
    @pl.when(j == num_k_tiles - 1)
    def _():
        k_total = num_k_tiles * tk
        # Global column K (= last neg column) is still sitting in the carry.
        logits_ref[:, k_total:k_total + 1] = carry_s[...].astype(logits_ref.dtype)
        # Cross-entropy with label 0: lse - pos, summed over this row tile.
        row_loss = m_s[...] + jnp.log(s_s[...]) - pos_s[...]           # (TN, 1)
        total = jnp.sum(row_loss)
        loss_ref[...] = jnp.full(loss_ref.shape, total, dtype=loss_ref.dtype)


def _vmem_budget_bytes() -> int:
    """75% of per-core VMEM capacity, capped at 100 MiB (=> ~48 MiB on v7x)."""
    try:
        cap = int(pltpu.get_tpu_info().vmem_capacity_bytes)
    except Exception:
        cap = 64 * 1024 * 1024            # conservative fallback: v7x per-TC VMEM
    return int(min(cap * 3 // 4, 100 * 1024 * 1024))


def _select_tiles(n, c, k, in_itemsize, out_itemsize, budget):
    """Largest (tn, tk) whose real working set (+25% headroom) fits the budget."""
    tk_opts = [t for t in (2048, 1024, 512, 256, 128) if k % t == 0] or [k]
    tn_all = [t for t in (512, 256, 128, 64, 32, 16, 8) if n % t == 0] or [n]
    # Prefer row tiles that keep >= 2 row tiles so the "parallel" batch axis can
    # split across the two TensorCores on v7x; fall back to a single row tile.
    tn_opts = [t for t in tn_all if n // t >= 2] + [t for t in tn_all if n // t < 2]

    def vmem_need(tn, tk):
        need = 2 * (2 * tn * c * in_itemsize           # q, k tiles (double-buffered)
                    + c * tk * in_itemsize             # queue tile (double-buffered)
                    + tn * (k + 1) * out_itemsize      # resident logits row slab
                    + 8 * 128 * 4)                     # per-tile loss partial block
        need += 4 * tn * 128 * 4                       # (tn,1) f32 scratch, lane-padded
        return int(need * 1.25)                        # headroom for Mosaic internals

    for tn in tn_opts:
        for tk in tk_opts:
            if vmem_need(tn, tk) <= budget:
                return tn, tk
    return tn_all[-1], tk_opts[-1]


def moco_loss(queries, keys, queue, temperature=0.2, *,
              tn=None, tk=None, logits_dtype=jnp.float32,
              compute_dtype=jnp.bfloat16):
    """Pallas implementation of MoCoLoss.forward.

    Returns (loss, logits, labels) matching the PyTorch module:
      loss   : f32 scalar (cross-entropy with label 0)
      logits : (N, 1 + K) in `logits_dtype` (f32 default; bf16 halves the store
               traffic, the dominant cost on v5e/v6e), already divided by T
      labels : int32 (N,), all zeros
    """
    n, c = queries.shape
    c2, k = queue.shape
    assert keys.shape == (n, c) and c2 == c

    # bf16 operands: half the q/k/queue DMA traffic, native MXU rate everywhere;
    # accumulation / logsumexp / loss math stays f32 inside the kernel.
    if compute_dtype is not None:
        queries = queries.astype(compute_dtype)
        keys = keys.astype(compute_dtype)
        queue = queue.astype(compute_dtype)

    in_itemsize = queries.dtype.itemsize
    out_itemsize = jnp.dtype(logits_dtype).itemsize
    budget = _vmem_budget_bytes()
    auto_tn, auto_tk = _select_tiles(n, c, k, in_itemsize, out_itemsize, budget)
    tn = auto_tn if tn is None else tn
    tk = auto_tk if tk is None else tk
    assert n % tn == 0, "N must be a multiple of the row tile"
    assert k % tk == 0, "K must be a multiple of the queue tile (pad the queue)"
    num_n_tiles, num_k_tiles = n // tn, k // tk

    kernel = functools.partial(_moco_kernel, temperature=float(temperature),
                               tk=tk, num_k_tiles=num_k_tiles)

    cost = pl.CostEstimate(
        flops=2 * n * c * (k + 1),
        transcendentals=n * k + 2 * n * num_k_tiles,
        bytes_accessed=(2 * n * c * in_itemsize              # q, k
                        + num_n_tiles * c * k * in_itemsize  # queue, re-streamed
                        + n * (k + 1) * out_itemsize         # logits store
                        + num_n_tiles * 8 * 128 * 4))        # loss partials

    logits, loss_part = pl.pallas_call(
        kernel,
        grid=(num_n_tiles, num_k_tiles),
        in_specs=[
            pl.BlockSpec((tn, c), lambda i, j: (i, 0)),      # queries (row tile)
            pl.BlockSpec((tn, c), lambda i, j: (i, 0)),      # keys    (row tile)
            pl.BlockSpec((c, tk), lambda i, j: (0, j)),      # queue   (streamed)
        ],
        out_specs=(
            # Full-width logits row slab, VMEM-resident across the K loop: the
            # kernel writes [pos | neg]/T directly -> no concat/slice epilogue.
            pl.BlockSpec((tn, 1 + k), lambda i, j: (i, 0)),
            pl.BlockSpec((1, 8, 128), lambda i, j: (i, 0, 0)),  # loss partials
        ),
        out_shape=(
            jax.ShapeDtypeStruct((n, 1 + k), logits_dtype),
            jax.ShapeDtypeStruct((num_n_tiles, 8, 128), jnp.float32),
        ),
        scratch_shapes=[
            pltpu.VMEM((tn, 1), jnp.float32),   # running max  m
            pltpu.VMEM((tn, 1), jnp.float32),   # running sum-of-exp  s
            pltpu.VMEM((tn, 1), jnp.float32),   # positive logit (for the loss)
            pltpu.VMEM((tn, 1), jnp.float32),   # carry: last neg col of prev tile
        ],
        compiler_params=pltpu.CompilerParams(
            dimension_semantics=("parallel", "arbitrary"),
            vmem_limit_bytes=budget,
        ),
        cost_estimate=cost,
    )(queries, keys, queue)

    loss = jnp.sum(loss_part[:, 0, 0]) / jnp.float32(n)
    # Labels are all zeros (positive is column 0); int32 is JAX's default int.
    labels = jnp.zeros((n,), dtype=jnp.int32)
    return loss, logits, labels


def _reference(queries, keys, queue, temperature=0.2):
    """Plain-JAX reference mirroring the PyTorch module, for validation."""
    pos = jnp.einsum('nc,nc->n', queries, keys)[:, None]
    neg = jnp.einsum('nc,ck->nk', queries, queue)
    logits = jnp.concatenate([pos, neg], axis=1) / temperature
    lse = jax.scipy.special.logsumexp(logits, axis=1)
    loss = jnp.mean(lse - logits[:, 0])
    labels = jnp.zeros((queries.shape[0],), dtype=jnp.int32)
    return loss, logits, labels


if __name__ == "__main__":
    # MXU-friendly but small synthetic shapes: N=256 rows, C=128 features,
    # queue K=1024.
    N, C, K = 256, 128, 1024
    TEMP = 0.2
    key = jax.random.PRNGKey(0)
    kq, kk, kqueue = jax.random.split(key, 3)

    q = jax.random.normal(kq, (N, C), dtype=jnp.float32)
    kv = jax.random.normal(kk, (N, C), dtype=jnp.float32)
    q = q / jnp.linalg.norm(q, axis=1, keepdims=True)
    kv = kv / jnp.linalg.norm(kv, axis=1, keepdims=True)
    queue = jax.random.normal(kqueue, (C, K), dtype=jnp.float32)
    queue = queue / jnp.linalg.norm(queue, axis=0, keepdims=True)

    # Reference computed on the exact bf16-rounded operands the kernel consumes.
    q_r = q.astype(jnp.bfloat16).astype(jnp.float32)
    k_r = kv.astype(jnp.bfloat16).astype(jnp.float32)
    queue_r = queue.astype(jnp.bfloat16).astype(jnp.float32)
    ref_loss, ref_logits, ref_labels = _reference(q_r, k_r, queue_r, TEMP)

    # 1) Explicit small tiles -> grid (2, 4): exercises the online logsumexp and
    #    the cross-tile carry of the shifted logits store.
    loss, logits, labels = moco_loss(q, kv, queue, temperature=TEMP, tn=128, tk=256)
    jax.block_until_ready((loss, logits, labels))
    assert logits.shape == (N, 1 + K) and logits.dtype == jnp.float32
    assert labels.shape == (N,) and labels.dtype == jnp.int32
    assert jnp.allclose(logits, ref_logits, atol=2e-4, rtol=2e-4)
    assert jnp.allclose(loss, ref_loss, atol=1e-4, rtol=1e-4)
    assert jnp.array_equal(labels, ref_labels)

    # 2) VMEM-aware auto-selected tiles (the default fast path).
    loss2, logits2, _ = moco_loss(q, kv, queue, temperature=TEMP)
    jax.block_until_ready((loss2, logits2))
    assert jnp.allclose(logits2, ref_logits, atol=2e-4, rtol=2e-4)
    assert jnp.allclose(loss2, ref_loss, atol=1e-4, rtol=1e-4)

    print("KERNEL_OK")
</pallas_src>

<mosaic_0001>
module attributes {stable_mosaic.version = 11 : i64} {
  func.func @_moco_kernel(%arg0: i32, %arg1: i32, %arg2: memref<128x128xbf16, #tpu.memory_space<vmem>>, %arg3: memref<128x128xbf16, #tpu.memory_space<vmem>>, %arg4: memref<128x256xbf16, #tpu.memory_space<vmem>>, %arg5: memref<128x1025xf32, #tpu.memory_space<vmem>>, %arg6: memref<1x8x128xf32, #tpu.memory_space<vmem>>, %arg7: memref<128x1xf32, #tpu.memory_space<vmem>>, %arg8: memref<128x1xf32, #tpu.memory_space<vmem>>, %arg9: memref<128x1xf32, #tpu.memory_space<vmem>>, %arg10: memref<128x1xf32, #tpu.memory_space<vmem>>) attributes {dimension_semantics = [#tpu.dimension_semantics<parallel>, #tpu.dimension_semantics<arbitrary>], iteration_bounds = array<i64: 2, 4>, scalar_prefetch = 0 : i64, scratch_operands = 4 : i64, tpu.core_type = #tpu.core_type<tc>, window_params = [{transform_indices = @transform_0, window_bounds = array<i64: 128, 128>}, {transform_indices = @transform_1, window_bounds = array<i64: 128, 128>}, {transform_indices = @transform_2, window_bounds = array<i64: 128, 256>}, {transform_indices = @transform_3, window_bounds = array<i64: 128, 1025>}, {transform_indices = @transform_4, window_bounds = array<i64: 1, 8, 128>}]} {
    %c0 = arith.constant 0 : index
    %c0_0 = arith.constant 0 : index
    %0 = vector.load %arg2[%c0, %c0_0] : memref<128x128xbf16, #tpu.memory_space<vmem>>, vector<128x128xbf16>
    %c0_1 = arith.constant 0 : index
    %c0_2 = arith.constant 0 : index
    %1 = vector.load %arg4[%c0_1, %c0_2] : memref<128x256xbf16, #tpu.memory_space<vmem>>, vector<128x256xbf16>
    %cst = arith.constant dense<0.000000e+00> : vector<128x256xf32>
    %2 = tpu.matmul %0, %1, %cst {dimension_numbers = #tpu.dot_dimension_numbers<[1], [0], [0], [1], [0, 0, 1, 1], [], []>} : vector<128x128xbf16>, vector<128x256xbf16>, vector<128x256xf32> -> vector<128x256xf32>
    %cst_3 = arith.constant 5.000000e+00 : f32
    %3 = vector.broadcast %cst_3 : f32 to vector<128x256xf32>
    %4 = arith.mulf %2, %3 : vector<128x256xf32>
    %c0_i32 = arith.constant 0 : i32
    %5 = arith.cmpi eq, %arg1, %c0_i32 : i32
    %6 = arith.extui %5 : i1 to i32
    %cst_4 = arith.constant 5.000000e+00 : f32
    %c0_i32_5 = arith.constant 0 : i32
    %7 = arith.cmpi ne, %6, %c0_i32_5 : i32
    scf.if %7 {
      %36 = arith.extf %0 : vector<128x128xbf16> to vector<128x128xf32>
      %c0_22 = arith.constant 0 : index
      %c0_23 = arith.constant 0 : index
      %37 = vector.load %arg3[%c0_22, %c0_23] : memref<128x128xbf16, #tpu.memory_space<vmem>>, vector<128x128xbf16>
      %38 = arith.extf %37 : vector<128x128xbf16> to vector<128x128xf32>
      %39 = arith.mulf %36, %38 : vector<128x128xf32>
      %cst_24 = arith.constant dense<0.000000e+00> : vector<128xf32>
      %40 = vector.multi_reduction <add>, %39, %cst_24 [1] : vector<128x128xf32> to vector<128xf32>
      %41 = vector.shape_cast %40 : vector<128xf32> to vector<128x1xf32>
      %42 = vector.broadcast %cst_4 : f32 to vector<128x1xf32>
      %43 = arith.mulf %41, %42 : vector<128x1xf32>
      %c0_25 = arith.constant 0 : index
      %c0_26 = arith.constant 0 : index
      %44 = vector.load %arg9[%c0_25, %c0_26] : memref<128x1xf32, #tpu.memory_space<vmem>>, vector<128x1xf32>
      tpu.vector_store %arg9[%c0_25, %c0_26], %43 {strides = array<i32>} : memref<128x1xf32, #tpu.memory_space<vmem>>, vector<128x1xf32>,
      %c0_27 = arith.constant 0 : index
      %c0_28 = arith.constant 0 : index
      %45 = vector.load %arg10[%c0_27, %c0_28] : memref<128x1xf32, #tpu.memory_space<vmem>>, vector<128x1xf32>
      tpu.vector_store %arg10[%c0_27, %c0_28], %43 {strides = array<i32>} : memref<128x1xf32, #tpu.memory_space<vmem>>, vector<128x1xf32>,
      %c0_29 = arith.constant 0 : index
      %c0_30 = arith.constant 0 : index
      %46 = vector.load %arg7[%c0_29, %c0_30] : memref<128x1xf32, #tpu.memory_space<vmem>>, vector<128x1xf32>
      tpu.vector_store %arg7[%c0_29, %c0_30], %43 {strides = array<i32>} : memref<128x1xf32, #tpu.memory_space<vmem>>, vector<128x1xf32>,
      %cst_31 = arith.constant 1.000000e+00 : f32
      %47 = vector.broadcast %cst_31 : f32 to vector<128x1xf32>
      %c0_32 = arith.constant 0 : index
      %c0_33 = arith.constant 0 : index
      %48 = vector.load %arg8[%c0_32, %c0_33] : memref<128x1xf32, #tpu.memory_space<vmem>>, vector<128x1xf32>
      tpu.vector_store %arg8[%c0_32, %c0_33], %47 {strides = array<i32>} : memref<128x1xf32, #tpu.memory_space<vmem>>, vector<128x1xf32>,
    } else {
    }
    %c0_6 = arith.constant 0 : index
    %c0_7 = arith.constant 0 : index
    %8 = vector.load %arg10[%c0_6, %c0_7] : memref<128x1xf32, #tpu.memory_space<vmem>>, vector<128x1xf32>
    %9 = vector.extract_strided_slice %4 {offsets = [0, 0], sizes = [128, 255], strides = [1, 1]} : vector<128x256xf32> to vector<128x255xf32>
    %10 = tpu.concatenate %8, %9 in 1 : vector<128x1xf32>, vector<128x255xf32> -> vector<128x256xf32>
    %c256_i32 = arith.constant 256 : i32
    %11 = arith.muli %arg1, %c256_i32 : i32
    %12 = tpu.assume_multiple %11, 256 : i32
    %c0_8 = arith.constant 0 : index
    %13 = arith.index_cast %12 : i32 to index
    %14 = vector.load %arg5[%c0_8, %13] : memref<128x1025xf32, #tpu.memory_space<vmem>>, vector<128x256xf32>
    tpu.vector_store %arg5[%c0_8, %13], %10 {strides = array<i32>} : memref<128x1025xf32, #tpu.memory_space<vmem>>, vector<128x256xf32>,
    %15 = vector.extract_strided_slice %4 {offsets = [0, 255], sizes = [128, 1], strides = [1, 1]} : vector<128x256xf32> to vector<128x1xf32>
    %c0_9 = arith.constant 0 : index
    %c0_10 = arith.constant 0 : index
    %16 = vector.load %arg10[%c0_9, %c0_10] : memref<128x1xf32, #tpu.memory_space<vmem>>, vector<128x1xf32>
    tpu.vector_store %arg10[%c0_9, %c0_10], %15 {strides = array<i32>} : memref<128x1xf32, #tpu.memory_space<vmem>>, vector<128x1xf32>,
    %c0_11 = arith.constant 0 : index
    %c0_12 = arith.constant 0 : index
    %17 = vector.load %arg7[%c0_11, %c0_12] : memref<128x1xf32, #tpu.memory_space<vmem>>, vector<128x1xf32>
    %cst_13 = arith.constant dense<0xFF800000> : vector<128xf32>
    %18 = vector.multi_reduction <maximumf>, %4, %cst_13 [1] : vector<128x256xf32> to vector<128xf32>
    %19 = vector.shape_cast %18 : vector<128xf32> to vector<128x1xf32>
    %20 = arith.maximumf %17, %19 : vector<128x1xf32>
    %c0_14 = arith.constant 0 : index
    %c0_15 = arith.constant 0 : index
    %21 = vector.load %arg8[%c0_14, %c0_15] : memref<128x1xf32, #tpu.memory_space<vmem>>, vector<128x1xf32>
    %22 = arith.subf %17, %20 : vector<128x1xf32>
    %23 = math.exp %22 : vector<128x1xf32>
    %24 = arith.mulf %21, %23 : vector<128x1xf32>
    %25 = vector.broadcast %20 : vector<128x1xf32> to vector<128x256xf32>
    %26 = arith.subf %4, %25 : vector<128x256xf32>
    %27 = math.exp %26 : vector<128x256xf32>
    %cst_16 = arith.constant dense<0.000000e+00> : vector<128xf32>
    %28 = vector.multi_reduction <add>, %27, %cst_16 [1] : vector<128x256xf32> to vector<128xf32>
    %29 = vector.shape_cast %28 : vector<128xf32> to vector<128x1xf32>
    %30 = arith.addf %24, %29 : vector<128x1xf32>
    %c0_17 = arith.constant 0 : index
    %c0_18 = arith.constant 0 : index
    %31 = vector.load %arg8[%c0_17, %c0_18] : memref<128x1xf32, #tpu.memory_space<vmem>>, vector<128x1xf32>
    tpu.vector_store %arg8[%c0_17, %c0_18], %30 {strides = array<i32>} : memref<128x1xf32, #tpu.memory_space<vmem>>, vector<128x1xf32>,
    %c0_19 = arith.constant 0 : index
    %c0_20 = arith.constant 0 : index
    %32 = vector.load %arg7[%c0_19, %c0_20] : memref<128x1xf32, #tpu.memory_space<vmem>>, vector<128x1xf32>
    tpu.vector_store %arg7[%c0_19, %c0_20], %20 {strides = array<i32>} : memref<128x1xf32, #tpu.memory_space<vmem>>, vector<128x1xf32>,
    %c3_i32 = arith.constant 3 : i32
    %33 = arith.cmpi eq, %arg1, %c3_i32 : i32
    %34 = arith.extui %33 : i1 to i32
    %c0_i32_21 = arith.constant 0 : i32
    %35 = arith.cmpi ne, %34, %c0_i32_21 : i32
    scf.if %35 {
      %c0_22 = arith.constant 0 : index
      %c0_23 = arith.constant 0 : index
      %36 = vector.load %arg10[%c0_22, %c0_23] : memref<128x1xf32, #tpu.memory_space<vmem>>, vector<128x1xf32>
      %c0_24 = arith.constant 0 : index
      %c1024 = arith.constant 1024 : index
      %37 = vector.load %arg5[%c0_24, %c1024] : memref<128x1025xf32, #tpu.memory_space<vmem>>, vector<128x1xf32>
      tpu.vector_store %arg5[%c0_24, %c1024], %36 {strides = array<i32>} : memref<128x1025xf32, #tpu.memory_space<vmem>>, vector<128x1xf32>,
      %c0_25 = arith.constant 0 : index
      %c0_26 = arith.constant 0 : index
      %38 = vector.load %arg7[%c0_25, %c0_26] : memref<128x1xf32, #tpu.memory_space<vmem>>, vector<128x1xf32>
      %c0_27 = arith.constant 0 : index
      %c0_28 = arith.constant 0 : index
      %39 = vector.load %arg8[%c0_27, %c0_28] : memref<128x1xf32, #tpu.memory_space<vmem>>, vector<128x1xf32>
      %40 = math.log %39 : vector<128x1xf32>
      %41 = arith.addf %38, %40 : vector<128x1xf32>
      %c0_29 = arith.constant 0 : index
      %c0_30 = arith.constant 0 : index
      %42 = vector.load %arg9[%c0_29, %c0_30] : memref<128x1xf32, #tpu.memory_space<vmem>>, vector<128x1xf32>
      %43 = arith.subf %41, %42 : vector<128x1xf32>
      %44 = vector.shape_cast %43 : vector<128x1xf32> to vector<1x128x1xf32>
      %cst_31 = arith.constant dense<0.000000e+00> : vector<1xf32>
      %45 = vector.multi_reduction <add>, %44, %cst_31 [1, 2] : vector<1x128x1xf32> to vector<1xf32>
      %46 = vector.shape_cast %45 : vector<1xf32> to vector<1x1x1xf32>
      %47 = vector.extract %46[0, 0, 0] : f32 from vector<1x1x1xf32>
      %48 = vector.broadcast %47 : f32 to vector<1x8x128xf32>
      %c0_32 = arith.constant 0 : index
      %c0_33 = arith.constant 0 : index
      %c0_34 = arith.constant 0 : index
      %49 = vector.load %arg6[%c0_32, %c0_33, %c0_34] : memref<1x8x128xf32, #tpu.memory_space<vmem>>, vector<1x8x128xf32>
      tpu.vector_store %arg6[%c0_32, %c0_33, %c0_34], %48 {strides = array<i32>} : memref<1x8x128xf32, #tpu.memory_space<vmem>>, vector<1x8x128xf32>,
    } else {
    }
    return
  }
  func.func @transform_0(%arg0: i32, %arg1: i32) -> (i32, i32) {
    %c0_i32 = arith.constant 0 : i32
    %c0_i32_0 = arith.constant 0 : i32
    return %arg0, %c0_i32 : i32, i32
  }
  func.func @transform_1(%arg0: i32, %arg1: i32) -> (i32, i32) {
    %c0_i32 = arith.constant 0 : i32
    %c0_i32_0 = arith.constant 0 : i32
    return %arg0, %c0_i32 : i32, i32
  }
  func.func @transform_2(%arg0: i32, %arg1: i32) -> (i32, i32) {
    %c0_i32 = arith.constant 0 : i32
    %c0_i32_0 = arith.constant 0 : i32
    return %c0_i32, %arg1 : i32, i32
  }
  func.func @transform_3(%arg0: i32, %arg1: i32) -> (i32, i32) {
    %c0_i32 = arith.constant 0 : i32
    %c0_i32_0 = arith.constant 0 : i32
    return %arg0, %c0_i32 : i32, i32
  }
  func.func @transform_4(%arg0: i32, %arg1: i32) -> (i32, i32, i32) {
    %c0_i32 = arith.constant 0 : i32
    %c0_i32_0 = arith.constant 0 : i32
    %c0_i32_1 = arith.constant 0 : i32
    return %arg0, %c0_i32, %c0_i32_0 : i32, i32, i32
  }
}

</mosaic_0001>

<bundles_post_ra>
// kernel: tpu_custom_call.1
= control target key start
LH: loop header
LB: loop body
LE: loop exit
PB: predicated region body
PF: predicated region fallthrough
CT: control target
= control target key end

     0   :  { %s3509_s0 = inlined_call_operand.hbm [shape: bf16[256,128], index: 0, kind: input, shape index: {}]   ;;  %s3510_s1 = inlined_call_operand.hbm [shape: bf16[256,128], index: 1, kind: input, shape index: {}]   ;;  %s3511_s2 = inlined_call_operand.hbm [shape: bf16[128,1024], index: 2, kind: input, shape index: {}]   ;;  %s3512_s3 = inlined_call_operand.vmem [shape: f32[256,1025], index: 3, kind: output, shape index: {0}]   ;;  %s3513_s4 = inlined_call_operand.hbm [shape: f32[2,8,128], index: 4, kind: output, shape index: {1}]  }
   0x1   :  { %3542 = sst [smem:[#allocation40_spill]] %s3510_s1 }
   0x2   :  { %3543 = sst [smem:[#allocation41_spill]] %s3512_s3 }
   0x3   :  { %3544 = sst [smem:[#allocation42_spill]] %s3513_s4 }
   0x4   :  { %10 = vsyncpa [#allocation7], 0 }
   0x5   :  { %12 = vsyncpa [#allocation7 + $0x1], 0 }
   0x6   :  { %13 = vsyncpa [#allocation10], 0 }
   0x7   :  { %15 = vsyncpa [#allocation10 + $0x1], 0 }
   0x8   :  { %16 = vsyncpa [#allocation8], 0 }
   0x9   :  { %18 = vsyncpa [#allocation8 + $0x1], 0  ;;  %s2509_s15 = smov 0   ;;  %s2511_s16 = smov 0  }
   0xa   :  { %s2513_s17 = smov 0   ;;  %s2515_s18 = smov 0  }
   0xb   :  { %s2517_s19 = smov 0   ;;  %s2519_s20 = smov 0  }
   0xc   :  { %s2521_s21 = smov 0   ;;  %s2523_s22 = smov 0  }
   0xd   :  { %s2525_s23 = smov 0   ;;  %s2527_s24 = smov 0  }
   0xe   :  { %s2529_s25 = smov 0  }
   0xf LB: > { %3545 = sst [smem:[#allocation17_spill]] %s2442_s18  ;;  %s2565_s26 = sadd.s32 4294967295, %s2470_s25   ;;  %s2470_s25 = sphi %s2529_s25, %s24_s25   ;;  %s2466_s24 = sphi %s2527_s24, %s3637_s24   ;;  %s2462_s23 = sphi %s2525_s23, %s3636_s23   ;;  %s2458_s22 = sphi %s2523_s22, %s3635_s22   ;;  %s2454_s21 = sphi %s2521_s21, %s3634_s21   ;;  %s2450_s20 = sphi %s2519_s20, %s3633_s20   ;;  %s2446_s19 = sphi %s2517_s19, %s3632_s19   ;;  %s2442_s18 = sphi %s2515_s18, %s3631_s18   ;;  %s2438_s17 = sphi %s2513_s17, %s3630_s17   ;;  %s2434_s16 = sphi %s2511_s16, %s3629_s16   ;;  %s2430_s15 = sphi %s2509_s15, %s3628_s15  }
  0x10   : > { %3546 = sst [smem:[#allocation18_spill]] %s2454_s21  ;;  %s1856_s27 = sadd.s32 4294967294, %s2470_s25  }
  0x11   : > { %3547 = sst [smem:[#allocation19_spill]] %s2458_s22  ;;  %s33_s28 = sadd.s32 1, %s2462_s23 }
  0x12   : > { %s36_s29 = sadd.s32 1, %s2466_s24  ;;  %p34_p0 = scmp.ge.s32.totalorder %s33_s28, 4 }
  0x13   : > { %s43_s30 = sadd.s32 1, %s2450_s20  ;;  %p50_p1 = scmp.ne.s32.totalorder %s2450_s20, %s2446_s19 }
  0x14   : > { %p3522_p2 = scmp.eq.s32.totalorder %s2470_s25, 0  ;;  %s3639_s28 = smov (%p34_p0, %s33_s28), 0 }
  0x15   : > { %3548 = sst [smem:[#allocation20_spill]] %s3639_s28  ;;  %s3641_s29 = smov (!%p34_p0, %s36_s29), %s2466_s24 }
  0x16   : > { %p2582_p3 = por %p3522_p2, %p50_p1  ;;  %p56_p4 = scmp.ne.s32.totalorder %s2446_s19, %s2442_s18 }
  0x17   : > { %p38_p5 = scmp.ge.s32.totalorder %s3641_s29, 2  ;;  %p3521_p6 = scmp.eq.s32.totalorder %s2565_s26, 0 }
  0x18   : > { %s92_s6 = ssub.s32 %s2462_s23, %s3639_s28  ;;  %p158_p7 = scmp.eq.s32.totalorder %s2565_s26, 7 }
  0x19   : > { %s3643_s29 = smov (%p38_p5, %s3641_s29), 0  ;;  %p2599_p8 = por %p3521_p6, %p56_p4 }
  0x1a   : > { %3550 = sst [smem:[#allocation21_spill]] %s3643_s29  ;;  %p2603_p9 = scmp.eq.s32.totalorder %s92_s6, 0 }
  0x1b   : > { %s40_s9 = ssub.s32 %s2466_s24, %s3643_s29  ;;  %p2612_p10 = por %p158_p7, %p50_p1 }
  0x1c   : > { %p41_p11 = scmp.eq.s32.totalorder %s40_s9, 0  ;;  %p164_p12 = scmp.eq.s32.totalorder %s1856_s27, 7 }
  0x1d   : > { %s3553_s10 = scalar_select %p2612_p10, 1, 0 }
  0x1e   : > { %p3520_p13 = scmp.lt.s32.totalorder %s2470_s25, 8  ;;  %p2623_p0 = por %p164_p12, %p56_p4 }
  0x1f   : > { %3554 = sst [smem:[#allocation22_spill]] %s3553_s10  ;;  %s3517_s13 = sand.u32 1, %s2450_s20  }
  0x20   : > { %s2618_s11 = scalar_select %p41_p11, %s2450_s20, %s43_s30  }
  0x21   : > { %s3556_s12 = scalar_select %p2623_p0, 1, 0 }
  0x22   : > { %3555 = sst [smem:[#allocation23_spill]] %s2618_s11  ;;  %s2630_s14 = sshll.u32 %s3517_s13, 6 }
  0x23   : > { %3557 = sst [smem:[#allocation24_spill]] %s3556_s12  ;;  %s1907_s6 = sshll.u32 %s2466_s24, 10 }
  0x24   : > { %p2637_p1 = pnand %p3520_p13, %p2582_p3  ;;  %s205_s27 = sand.u32 1, %s2470_s25  }
  0x25   : > { %s3559_s1 = sld [smem:[#allocation40_spill]]  ;;  %s209_s11 = scalar_lea.vmem [#allocation9], %s2630_s14 }
  0x26   : > { %s216_s12 = sshll.u32 %s209_s11, 4  ;;  %p245_p5 = scmp.lt.s32.totalorder %s2470_s25, 9  ;;  %s217_s12 = int_to_ptr.vmem [resolvable:$true] %s216_s12 }
  0x27   : > { %s2650_s13 = scalar_lea.sflag [#allocation10], %s205_s27  ;;  %p2260_p3 = pneg %p2637_p1 }
  0x28   : > { %s2271_s5 = scalar_lea.vmem %s217_s12, 1024  ;;  %s2472_s18 = smov [#allocation9]  }
  0x29   : > { %p2272_p7 = scmp.ne.s32.totalorder %s217_s12, %s2271_s5  ;;  %s2276_s4 = sshll.u32 %s2472_s18, 4  ;;  %s2277_s4 = int_to_ptr.vmem [resolvable:$false] %s2276_s4 }
  0x2a   : > { %s2278_s30 = scalar_lea.vmem %s2277_s4, 2048  ;;  %p2279_p13 = scmp.lt.s32.totalorder %s217_s12, %s2277_s4 }
  0x2b   : > { %s215_s28 = scalar_lea.hbm %s3559_s1, %s1907_s6  ;;  %p2274_p11 = pnand %p2272_p7, %p2260_p3 }
  0x2c   : > { %p2280_p6 = scmp.lt.s32.totalorder %s2278_s30, %s2271_s5 }
  0x2d   : > { %p2275_p12 = pneg %p2274_p11 }
  0x2e   : > { %p2281_p2 = por %p2280_p6, %p2279_p13 }
  0x30   : > { %p2282_p4 = pnand %p2281_p2, %p2275_p12 }
  0x32   : > { %2285 = shalt.err (!%p2282_p4)
}
  0x33   : > { %s2473_s11 = smov 64   ;;  %s2474_s27 = smov 4  }
  0x34   : > { %1982 = dma.hbm_to_vmem [thread:$0]  (!%p2637_p1), %s215_s28, 1024, %s217_s12, %s2650_s13, %s2473_s11, %s2473_s11, %s2474_s27  }
  0x35   : > { %p3560_p7 = scmp.ge.s32.totalorder %s2470_s25, 1  ;;  %s194_s5 = scalar_lea.hbm %s3509_s0, %s1907_s6 }
  0x36   : > { %s188_s30 = scalar_lea.vmem [#allocation6], %s2630_s14  ;;  %s3562_s10 = sand.u32 1, %s2450_s20  }
  0x37   : > { %p2664_p11 = pnand %p3560_p7, %p245_p5  ;;  %s195_s1 = sshll.u32 %s188_s30, 4  ;;  %s196_s1 = int_to_ptr.vmem [resolvable:$true] %s195_s1 }
  0x38   : > { %s185_s21 = scalar_lea.sflag [#allocation7], %s3562_s10  ;;  %s2299_s3 = scalar_lea.vmem %s196_s1, 1024 }
  0x39   : > { %p2300_p2 = scmp.ne.s32.totalorder %s196_s1, %s2299_s3  ;;  %s2475_s28 = smov [#allocation6]  }
  0x3a   : > { %s2304_s12 = sshll.u32 %s2475_s28, 4  ;;  %s2305_s12 = int_to_ptr.vmem [resolvable:$false] %s2304_s12 }
  0x3b   : > { %p2302_p6 = pnand %p2300_p2, %p2260_p3  ;;  %s2306_s22 = scalar_lea.vmem %s2305_s12, 2048 }
  0x3c   : > { %p2307_p4 = scmp.lt.s32.totalorder %s196_s1, %s2305_s12  ;;  %p2308_p5 = scmp.lt.s32.totalorder %s2306_s22, %s2299_s3 }
  0x3d   : > { %p2303_p13 = pneg %p2302_p6 }
  0x3e   : > { %p2309_p12 = por %p2308_p5, %p2307_p4 }
  0x40   : > { %p2310_p7 = pnand %p2309_p12, %p2303_p13 }
  0x42   : > { %2313 = shalt.err (!%p2310_p7)
}
  0x43   : > { %1979 = dma.hbm_to_vmem [thread:$0]  (!%p2637_p1), %s194_s5, 1024, %s196_s1, %s185_s21, %s2473_s11, %s2473_s11, %s2474_s27  }
  0x44   : > { %s95_s10 = sadd.s32 1, %s2438_s17  ;;  %p102_p3 = scmp.ne.s32.totalorder %s2438_s17, %s2434_s16 }
  0x45   : > { %s2687_s3 = scalar_select %p2603_p9, %s2438_s17, %s95_s10  }
  0x46   : > { %p3563_p2 = scmp.eq.s32.totalorder %s2470_s25, 0  ;;  %p108_p13 = scmp.ne.s32.totalorder %s2434_s16, %s2430_s15 }
  0x47   : > { %s228_s22 = sand.u32 1, %s2438_s17   ;;  %s1909_s29 = sshll.u32 %s2462_s23, 7 }
  0x48   : > { %p104_p6 = por %p102_p3, %p3563_p2  ;;  %p3564_p4 = scmp.eq.s32.totalorder %s2565_s26, 0 }
  0x49   : > { %s1865_s6 = sshll.u32 %s228_s22, 7  ;;  %s236_s1 = scalar_lea.hbm %s3511_s2, %s1909_s29 }
  0x4a   : > { %p2697_p5 = por %p108_p13, %p3564_p4  ;;  %s230_s21 = scalar_lea.vmem [#allocation11], %s1865_s6 }
  0x4b   : > { %s237_s11 = sshll.u32 %s230_s21, 4  ;;  %p3566_p1 = scmp.lt.s32.totalorder %s2470_s25, 8  ;;  %s238_s11 = int_to_ptr.vmem [resolvable:$true] %s237_s11 }
  0x4c   : > { %s2327_s15 = scalar_lea.vmem %s238_s11, 2048  ;;  %s2476_s27 = smov [#allocation11]  }
  0x4d   : > { %p2706_p9 = pnand %p3566_p1, %p104_p6  ;;  %p2328_p7 = scmp.ne.s32.totalorder %s238_s11, %s2327_s15 }
  0x4e   : > { %s2332_s5 = sshll.u32 %s2476_s27, 4  ;;  %s2333_s5 = int_to_ptr.vmem [resolvable:$false] %s2332_s5 }
  0x4f   : > { %p2316_p12 = pneg %p2706_p9  ;;  %s2334_s30 = scalar_lea.vmem %s2333_s5, 4096 }
  0x50   : > { %p2335_p13 = scmp.lt.s32.totalorder %s238_s11, %s2333_s5  ;;  %p2336_p4 = scmp.lt.s32.totalorder %s2334_s30, %s2327_s15 }
  0x51   : > { %p2330_p3 = pnand %p2328_p7, %p2316_p12 }
  0x52   : > { %p2337_p0 = por %p2336_p4, %p2335_p13 }
  0x53   : > { %p2331_p2 = pneg %p2330_p3 }
  0x55   : > { %p2338_p10 = pnand %p2337_p0, %p2331_p2 }
  0x57   : > { %2341 = shalt.err (!%p2338_p10)
}
  0x58   : > { %s2477_s28 = smov 512   ;;  %s2478_s12 = smov 128  }
  0x59   : > { %s2479_s10 = smov 8   ;;  %249 = sbr.rel (%p2664_p11) target bundleno = 1331 (0x533), region = 32 }
  0x5a   : > { %1985 = dma.hbm_to_vmem [thread:$0]  (!%p2706_p9), %s236_s1, 2048, %s238_s11, %s2650_s13, %s2477_s28, %s2478_s12, %s2479_s10  }
  0x5e   : > { %s2718_s22 = sand.u32 1, %s2446_s19  }
  0x5f   : > { %s1869_s29 = sshll.u32 %s2718_s22, 6  ;;  %s252_s6 = scalar_lea.sflag [#allocation7], %s2718_s22 }
  0x60   : > { %s2722_s18 = scalar_lea.vmem [#allocation6], %s1869_s29 }
  0x61   : > { %2413 = dma.done.wait (%p2599_p8), %s252_s6, 1024  }
  0x62   : > { %2415 = vsyncadd (%p2599_p8), %s252_s6, 4294966272  ;;  %s260_s13 = sand.u32 1, %s2565_s26   ;;  %s2729_s9 = scalar_lea.vmem [#allocation9], %s1869_s29 }
  0x63   : > { %s261_s4 = scalar_lea.sflag [#allocation10], %s260_s13 }
  0x64   : > { %2417 = dma.done.wait (%p2599_p8), %s261_s4, 1024  }
  0x65   : > { %2419 = vsyncadd (%p2599_p8), %s261_s4, 4294966272  ;;  %s271_s1 = sand.u32 1, %s2434_s16  }
  0x66   : > { %s1871_s21 = sshll.u32 %s271_s1, 7 }
  0x67   : > { %s2736_s11 = scalar_lea.vmem [#allocation11], %s1871_s21 }
  0x68   : > { %2421 = dma.done.wait (%p2697_p5), %s261_s4, 2048  }
  0x69   : > { %2423 = vsyncadd (%p2697_p5), %s261_s4, 4294965248  ;;  %s3568_s26 = sld [smem:[#allocation19_spill]]  ;;  %s1872_s8 = sshll.u32 %s2718_s22, 3  ;;  %v2480_v0 = vmov 0   ;;  %v2088_v1 = vld [vmem:[%s2736_s11 + $0x74] ss:$8 sps:$4 sm:$0xff]  }
  0x6a   : > { %517 = vmatprep.mubr.bf16.mxu0 %v2480_v0  ;;  %557 = vmatprep.mubr.bf16.mxu1 %v2480_v0  ;;  %s3569_s5 = sld [smem:[#allocation41_spill]]  ;;  %v2090_v2 = vld [vmem:[%s2736_s11 + $0x70] ss:$8 sps:$4 sm:$0xff]   ;;  %v2091_v3 = vld [vmem:[%s2736_s11 + $0x64] ss:$8 sps:$4 sm:$0xff]   ;;  %s2871_s28 = scalar_lea.vmem [#allocation12], %s1872_s8 }
  0x6b   : > { %485 = vmatprep.subr.bf16.mxu0 %v2088_v1  ;;  %1949 = vmatprep.subr.bf16.mxu1 %v2088_v1  ;;  %v2093_v4 = vld [vmem:[%s2736_s11 + $0x60] ss:$8 sps:$4 sm:$0xff]   ;;  %v2094_v5 = vld [vmem:[%s2736_s11 + $0x54] ss:$8 sps:$4 sm:$0xff]   ;;  %v2096_v6 = vld [vmem:[%s2736_s11 + $0x50] ss:$8 sps:$4 sm:$0xff]  }
  0x6c   : > { %486 = vmatpush1.bf16.msra.mxu0 %v2090_v2  ;;  %1957 = vmatpush1.bf16.msra.mxu1 %v2090_v2  ;;  %v2097_v7 = vld [vmem:[%s2736_s11 + $0x44] ss:$8 sps:$4 sm:$0xff]   ;;  %v2099_v8 = vld [vmem:[%s2736_s11 + $0x40] ss:$8 sps:$4 sm:$0xff]   ;;  %v2100_v9 = vld [vmem:[%s2736_s11 + $0x34] ss:$8 sps:$4 sm:$0xff]  }
  0x6d   : > { %487 = vmatprep.subr.bf16.mxu0 %v2091_v3  ;;  %1950 = vmatprep.subr.bf16.mxu1 %v2091_v3  ;;  %v2102_v10 = vld [vmem:[%s2736_s11 + $0x30] ss:$8 sps:$4 sm:$0xff]   ;;  %v2103_v11 = vld [vmem:[%s2736_s11 + $0x24] ss:$8 sps:$4 sm:$0xff]   ;;  %v2105_v12 = vld [vmem:[%s2736_s11 + $0x20] ss:$8 sps:$4 sm:$0xff]  }
  0x6e   : > { %v2106_v13 = vld [vmem:[%s2736_s11 + $0x14] ss:$8 sps:$4 sm:$0xff]   ;;  %v2108_v14 = vld [vmem:[%s2736_s11 + $0x10] ss:$8 sps:$4 sm:$0xff]   ;;  %v2109_v15 = vld [vmem:[%s2736_s11 + $0x4] ss:$8 sps:$4 sm:$0xff]  }
  0x6f   : > { %s1873_s7 = sshll.u32 %s3568_s26, 4  ;;  %v2111_v16 = vld [vmem:[%s2736_s11] ss:$8 sps:$4 sm:$0xff]   ;;  %v2788_v21 = vld [vmem:[%s2722_s18 + $0x10] sm:$0xff]   ;;  %v2798_v23 = vld [vmem:[%s2722_s18 + $0x18] sm:$0xff]   ;;  %s3570_s12 = sld [smem:[#allocation18_spill]] }
  0x70   : > { %p318_p8 = scmp.lt.s32.totalorder %s1873_s7, 31  ;;  %488 = vmatpush1.bf16.msra.mxu0 %v2093_v4  ;;  %1958 = vmatpush1.bf16.msra.mxu1 %v2093_v4  ;;  %v2768_v17 = vld [vmem:[%s2722_s18] sm:$0xff]   ;;  %v2778_v19 = vld [vmem:[%s2722_s18 + $0x8] sm:$0xff]   ;;  %v2791_v22 = vld [vmem:[%s2722_s18 + $0x30] sm:$0xff]  }
  0x71   : > { %489 = vmatprep.subr.bf16.mxu0 %v2094_v5  ;;  %1951 = vmatprep.subr.bf16.mxu1 %v2094_v5  ;;  %v2771_v18 = vld [vmem:[%s2722_s18 + $0x20] sm:$0xff]   ;;  %v2781_v20 = vld [vmem:[%s2722_s18 + $0x28] sm:$0xff]   ;;  %v2801_v24 = vld [vmem:[%s2722_s18 + $0x38] sm:$0xff]  }
  0x72   : > { %s3645_s7 = smov (!%p318_p8, %s1873_s7), 31 }
  0x73   : > { %s1965_s15 = smul.u32 72, %s3645_s7 }
  0x74   : > { %490 = vmatpush1.bf16.msra.mxu0 %v2096_v6  ;;  %1959 = vmatpush1.bf16.msra.mxu1 %v2096_v6 }
  0x75   : > { %s2749_s30 = scalar_lea.vmem %s3569_s5, %s1965_s15  ;;  %491 = vmatprep.subr.bf16.mxu0 %v2097_v7  ;;  %1952 = vmatprep.subr.bf16.mxu1 %v2097_v7  ;;  %p1899_p10 = scmp.ne.s32.totalorder %s3570_s12, 0 }
  0x78   : > { %492 = vmatpush1.bf16.msra.mxu0 %v2099_v8  ;;  %1960 = vmatpush1.bf16.msra.mxu1 %v2099_v8 }
  0x79   : > { %493 = vmatprep.subr.bf16.mxu0 %v2100_v9  ;;  %1953 = vmatprep.subr.bf16.mxu1 %v2100_v9 }
  0x7c   : > { %494 = vmatpush1.bf16.msra.mxu0 %v2102_v10  ;;  %1961 = vmatpush1.bf16.msra.mxu1 %v2102_v10 }
  0x7d   : > { %495 = vmatprep.subr.bf16.mxu0 %v2103_v11  ;;  %1954 = vmatprep.subr.bf16.mxu1 %v2103_v11 }
  0x80   : > { %496 = vmatpush1.bf16.msra.mxu0 %v2105_v12  ;;  %1962 = vmatpush1.bf16.msra.mxu1 %v2105_v12 }
  0x81   : > { %497 = vmatprep.subr.bf16.mxu0 %v2106_v13  ;;  %1955 = vmatprep.subr.bf16.mxu1 %v2106_v13 }
  0x84   : > { %498 = vmatpush1.bf16.msra.mxu0 %v2108_v14  ;;  %1963 = vmatpush1.bf16.msra.mxu1 %v2108_v14 }
  0x85   : > { %499 = vmatprep.subr.bf16.mxu0 %v2109_v15  ;;  %1956 = vmatprep.subr.bf16.mxu1 %v2109_v15 }
  0x88   : > { %500 = vmatpush1.bf16.msra.mxu0 %v2111_v16  ;;  %1964 = vmatpush1.bf16.msra.mxu1 %v2111_v16 }
  0x8b   : > { %518 = vmatmul.mubr.bf16.vlgmr.msra.gmra.mxu0 %v2768_v17  ;;  %558 = vmatmul.mubr.bf16.vlgmr.msra.gmra.mxu1 %v2771_v18 }
  0x8c   : > { %527 = vmatprep.mubr.bf16.mxu0 %v2480_v0  ;;  %567 = vmatprep.mubr.bf16.mxu1 %v2480_v0 }
  0x93   : > { %528 = vmatmul.mubr.bf16.gmra.mxu0 %v2778_v19  ;;  %568 = vmatmul.mubr.bf16.gmra.mxu1 %v2781_v20 }
  0x94   : > { %537 = vmatprep.mubr.bf16.mxu0 %v2480_v0  ;;  %577 = vmatprep.mubr.bf16.mxu1 %v2480_v0 }
  0x9b   : > { %538 = vmatmul.mubr.bf16.gmra.mxu0 %v2788_v21  ;;  %578 = vmatmul.mubr.bf16.gmra.mxu1 %v2791_v22 }
  0x9c   : > { %547 = vmatprep.mubr.bf16.mxu0 %v2480_v0  ;;  %587 = vmatprep.mubr.bf16.mxu1 %v2480_v0 }
  0xa3   : > { %548 = vmatmul.mubr.bf16.gmra.mxu0 %v2798_v23  ;;  %588 = vmatmul.mubr.bf16.gmra.mxu1 %v2801_v24 }
 0x14b   : > { %v519_v25 = vpop.f32.mrf.mxu0  ;;  %v559_v26 = vpop.f32.mrf.mxu1 }
 0x14c   : > { %v2805_v27 = vmul.f32 5.0, %v519_v25  ;;  %v2807_v28 = vmul.f32 5.0, %v559_v26 }
 0x14d   : > { %v521_v29 = vpop.f32.mrf.mxu0  ;;  %v561_v30 = vpop.f32.mrf.mxu1 }
 0x14e   : > { %v2809_v31 = vmul.f32 5.0, %v521_v29  ;;  %v2811_v32 = vmul.f32 5.0, %v561_v30 }
 0x14f   : > { %v523_v33 = vpop.f32.mrf.mxu0  ;;  %v563_v34 = vpop.f32.mrf.mxu1 }
 0x150   : > { %v2813_v35 = vmul.f32 5.0, %v523_v33  ;;  %v2815_v36 = vmul.f32 5.0, %v563_v34 }
 0x151   : > { %v525_v37 = vpop.f32.mrf.mxu0  ;;  %v565_v38 = vpop.f32.mrf.mxu1 }
 0x152   : > { %v2817_v39 = vmul.f32 5.0, %v525_v37  ;;  %v2819_v40 = vmul.f32 5.0, %v565_v38 }
 0x153   : > { %v529_v41 = vpop.f32.mrf.mxu0  ;;  %v569_v42 = vpop.f32.mrf.mxu1 }
 0x154   : > { %v2821_v43 = vmul.f32 5.0, %v529_v41  ;;  %v2823_v44 = vmul.f32 5.0, %v569_v42 }
 0x155   : > { %v531_v45 = vpop.f32.mrf.mxu0  ;;  %v571_v46 = vpop.f32.mrf.mxu1 }
 0x156   : > { %v2825_v47 = vmul.f32 5.0, %v531_v45  ;;  %v2827_v48 = vmul.f32 5.0, %v571_v46 }
 0x157   : > { %v533_v49 = vpop.f32.mrf.mxu0  ;;  %v573_v50 = vpop.f32.mrf.mxu1 }
 0x158   : > { %v2829_v51 = vmul.f32 5.0, %v533_v49  ;;  %v2831_v52 = vmul.f32 5.0, %v573_v50 }
 0x159   : > { %v535_v53 = vpop.f32.mrf.mxu0  ;;  %v575_v54 = vpop.f32.mrf.mxu1 }
 0x15a   : > { %v2833_v55 = vmul.f32 5.0, %v535_v53  ;;  %v2835_v56 = vmul.f32 5.0, %v575_v54 }
 0x15b   : > { %v539_v57 = vpop.f32.mrf.mxu0  ;;  %v579_v58 = vpop.f32.mrf.mxu1 }
 0x15c   : > { %v2837_v59 = vmul.f32 5.0, %v539_v57  ;;  %v2839_v60 = vmul.f32 5.0, %v579_v58 }
 0x15d   : > { %v541_v61 = vpop.f32.mrf.mxu0  ;;  %v581_v62 = vpop.f32.mrf.mxu1 }
 0x15e   : > { %v2841_v63 = vmul.f32 5.0, %v541_v61  ;;  %v2843_v1 = vmul.f32 5.0, %v581_v62 }
 0x15f   : > { %v543_v2 = vpop.f32.mrf.mxu0  ;;  %v583_v3 = vpop.f32.mrf.mxu1 }
 0x160   : > { %v2845_v4 = vmul.f32 5.0, %v543_v2  ;;  %v2847_v5 = vmul.f32 5.0, %v583_v3 }
 0x161   : > { %v545_v6 = vpop.f32.mrf.mxu0  ;;  %v585_v7 = vpop.f32.mrf.mxu1 }
 0x162   : > { %v2849_v8 = vmul.f32 5.0, %v545_v6  ;;  %v2851_v9 = vmul.f32 5.0, %v585_v7 }
 0x163   : > { %v549_v10 = vpop.f32.mrf.mxu0  ;;  %v589_v11 = vpop.f32.mrf.mxu1 }
 0x164   : > { %v2853_v12 = vmul.f32 5.0, %v549_v10  ;;  %v2855_v13 = vmul.f32 5.0, %v589_v11 }
 0x165   : > { %v551_v14 = vpop.f32.mrf.mxu0  ;;  %v591_v15 = vpop.f32.mrf.mxu1 }
 0x166   : > { %v2857_v16 = vmul.f32 5.0, %v551_v14  ;;  %v2859_v25 = vmul.f32 5.0, %v591_v15  ;;  %633 = sbr.rel (%p1899_p10) target bundleno = 539 (0x21b), region = 48 }
 0x167   : > { %v553_v26 = vpop.f32.mrf.mxu0  ;;  %v593_v29 = vpop.f32.mrf.mxu1 }
 0x168   : > { %v2861_v30 = vmul.f32 5.0, %v553_v26  ;;  %v2863_v33 = vmul.f32 5.0, %v593_v29 }
 0x169   : > { %v555_v34 = vpop.f32.mrf.mxu0  ;;  %v595_v37 = vpop.f32.mrf.mxu1 }
 0x16a   : > { %v2865_v38 = vmul.f32 5.0, %v555_v34  ;;  %v2867_v41 = vmul.f32 5.0, %v595_v37 }
 0x16b   : > { %v636_v42 = vunpack.c.l.bf16 %v2778_v19  ;;  %v1942_v45 = vld [vmem:[%s2729_s9 + $0x8] sm:$0xff]   ;;  %v634_v46 = vunpack.c.l.bf16 %v2768_v17  ;;  %v1911_v49 = vld [vmem:[%s2729_s9] sm:$0xff]   ;;  %v637_v50 = vunpack.c.h.bf16 %v2778_v19  ;;  %v635_v53 = vunpack.c.h.bf16 %v2768_v17  ;;  %v1943_v62 = vld [vmem:[%s2729_s9 + $0x10] sm:$0xff]  }
 0x16c   : > { %v1916_v54 = vunpack.c.l.bf16 %v1942_v45  ;;  %v1912_v57 = vunpack.c.l.bf16 %v1911_v49  ;;  %v1917_v58 = vunpack.c.h.bf16 %v1942_v45  ;;  %v1913_v61 = vunpack.c.h.bf16 %v1911_v49  ;;  %v1944_v17 = vld [vmem:[%s2729_s9 + $0x18] sm:$0xff]   ;;  %v1945_v45 = vld [vmem:[%s2729_s9 + $0x20] sm:$0xff]  }
 0x16d   : > { %v639_v6 = vunpack.c.h.bf16 %v2788_v21  ;;  %v1921_v7 = vunpack.c.h.bf16 %v1943_v62  ;;  %v638_v10 = vunpack.c.l.bf16 %v2788_v21  ;;  %v1920_v11 = vunpack.c.l.bf16 %v1943_v62 }
 0x16e   : > { %v684_v2 = vmul.f32 %v1916_v54, %v636_v42  ;;  %v682_v3 = vmul.f32 %v1912_v57, %v634_v46  ;;  %v685_v19 = vmul.f32 %v1917_v58, %v637_v50  ;;  %v683_v14 = vmul.f32 %v1913_v61, %v635_v53  ;;  %v1946_v57 = vld [vmem:[%s2729_s9 + $0x28] sm:$0xff]  }
 0x16f   : > { %v687_v15 = vmul.f32 %v1921_v7, %v639_v6  ;;  %v686_v26 = vmul.f32 %v1920_v11, %v638_v10  ;;  %v641_v29 = vunpack.c.h.bf16 %v2798_v23  ;;  %v1925_v34 = vunpack.c.h.bf16 %v1944_v17  ;;  %v1947_v6 = vld [vmem:[%s2729_s9 + $0x30] sm:$0xff]  }
 0x170   : > { %702 = vadd.xlane.f32.xlu1 %v684_v2  ;;  %698 = vadd.xlane.f32.xlu0 %v682_v3  ;;  %v640_v37 = vunpack.c.l.bf16 %v2798_v23  ;;  %v1924_v42 = vunpack.c.l.bf16 %v1944_v17  ;;  %v643_v21 = vunpack.c.h.bf16 %v2771_v18  ;;  %v1929_v46 = vunpack.c.h.bf16 %v1945_v45  ;;  %v1948_v17 = vld [vmem:[%s2729_s9 + $0x38] sm:$0xff]  }
 0x171   : > { %v689_v49 = vmul.f32 %v1925_v34, %v641_v29  ;;  %v642_v53 = vunpack.c.l.bf16 %v2771_v18  ;;  %v1928_v54 = vunpack.c.l.bf16 %v1945_v45  ;;  %v645_v61 = vunpack.c.h.bf16 %v2781_v20 }
 0x172   : > { %v688_v50 = vmul.f32 %v1924_v42, %v640_v37  ;;  %v691_v58 = vmul.f32 %v1929_v46, %v643_v21  ;;  %v1933_v62 = vunpack.c.h.bf16 %v1946_v57  ;;  %v644_v2 = vunpack.c.l.bf16 %v2781_v20 }
 0x173   : > { %v690_v23 = vmul.f32 %v1928_v54, %v642_v53  ;;  %v1932_v3 = vunpack.c.l.bf16 %v1946_v57  ;;  %v647_v7 = vunpack.c.h.bf16 %v2791_v22  ;;  %v1937_v10 = vunpack.c.h.bf16 %v1947_v6 }
 0x174   : > { %704 = vadd.xlane.f32.xlu1 %v685_v19  ;;  %700 = vadd.xlane.f32.xlu0 %v683_v14  ;;  %v693_v18 = vmul.f32 %v1933_v62, %v645_v61  ;;  %v646_v19 = vunpack.c.l.bf16 %v2791_v22  ;;  %v1936_v14 = vunpack.c.l.bf16 %v1947_v6  ;;  %v1941_v20 = vunpack.c.h.bf16 %v1948_v17 }
 0x175   : > { %v692_v11 = vmul.f32 %v1932_v3, %v644_v2  ;;  %v648_v34 = vunpack.c.l.bf16 %v2801_v24  ;;  %v1940_v37 = vunpack.c.l.bf16 %v1948_v17  ;;  %vm746_vm0 = vcmask 7168  }
 0x176   : > { %v694_v29 = vmul.f32 %v1936_v14, %v646_v19  ;;  %v2481_v22 = vmov 1.0  }
 0x177   : > { %v696_v45 = vmul.f32 %v1940_v37, %v648_v34  ;;  %795 = vst.msk [vmem:[#allocation3] sm:$0xff] %vm746_vm0, %v2481_v22  ;;  %796 = vst.msk [vmem:[#allocation3 + $0x8] sm:$0xff] %vm746_vm0, %v2481_v22 }
 0x178   : > { %708 = vadd.xlane.f32.xlu1 %v687_v15  ;;  %706 = vadd.xlane.f32.xlu0 %v686_v26  ;;  %v695_v15 = vmul.f32 %v1937_v10, %v647_v7  ;;  %v649_v26 = vunpack.c.h.bf16 %v2801_v24  ;;  %797 = vst.msk [vmem:[#allocation3 + $0x10] sm:$0xff] %vm746_vm0, %v2481_v22  ;;  %798 = vst.msk [vmem:[#allocation3 + $0x18] sm:$0xff] %vm746_vm0, %v2481_v22 }
 0x179   : > { %799 = vst.msk [vmem:[#allocation3 + $0x20] sm:$0xff] %vm746_vm0, %v2481_v22  ;;  %800 = vst.msk [vmem:[#allocation3 + $0x28] sm:$0xff] %vm746_vm0, %v2481_v22 }
 0x17a   : > { %v697_v42 = vmul.f32 %v1941_v20, %v649_v26  ;;  %801 = vst.msk [vmem:[#allocation3 + $0x30] sm:$0xff] %vm746_vm0, %v2481_v22  ;;  %802 = vst.msk [vmem:[#allocation3 + $0x38] sm:$0xff] %vm746_vm0, %v2481_v22 }
 0x17b   : > { %803 = vst.msk [vmem:[#allocation3 + $0x40] sm:$0xff] %vm746_vm0, %v2481_v22  ;;  %804 = vst.msk [vmem:[#allocation3 + $0x48] sm:$0xff] %vm746_vm0, %v2481_v22 }
 0x17c   : > { %712 = vadd.xlane.f32.xlu1 %v689_v49  ;;  %710 = vadd.xlane.f32.xlu0 %v688_v50  ;;  %805 = vst.msk [vmem:[#allocation3 + $0x50] sm:$0xff] %vm746_vm0, %v2481_v22  ;;  %806 = vst.msk [vmem:[#allocation3 + $0x58] sm:$0xff] %vm746_vm0, %v2481_v22 }
 0x17d   : > { %807 = vst.msk [vmem:[#allocation3 + $0x60] sm:$0xff] %vm746_vm0, %v2481_v22  ;;  %808 = vst.msk [vmem:[#allocation3 + $0x68] sm:$0xff] %vm746_vm0, %v2481_v22 }
 0x17e   : > { %809 = vst.msk [vmem:[#allocation3 + $0x70] sm:$0xff] %vm746_vm0, %v2481_v22  ;;  %810 = vst.msk [vmem:[#allocation3 + $0x78] sm:$0xff] %vm746_vm0, %v2481_v22 }
 0x180   : > { %716 = vadd.xlane.f32.xlu1 %v691_v58  ;;  %714 = vadd.xlane.f32.xlu0 %v690_v23 }
 0x184   : > { %720 = vadd.xlane.f32.xlu1 %v693_v18  ;;  %718 = vadd.xlane.f32.xlu0 %v692_v11 }
 0x188   : > { %724 = vadd.xlane.f32.xlu1 %v695_v15  ;;  %722 = vadd.xlane.f32.xlu0 %v694_v29 }
 0x18c   : > { %728 = vadd.xlane.f32.xlu1 %v697_v42  ;;  %726 = vadd.xlane.f32.xlu0 %v696_v45 }
 0x1f9   : > { %v703_v24 = vpop.xlane.xlu1 %702  ;;  %v699_v21 = vpop.xlane.xlu0 %698 }
 0x1fa   : > { %v732_v46 = vmul.f32 5.0, %v703_v24  ;;  %v730_v49 = vmul.f32 5.0, %v699_v21 }
 0x1fc   : > { %749 = vst.msk [vmem:[#allocation4 + $0x10] sm:$0xff] %vm746_vm0, %v732_v46  ;;  %765 = vst.msk [vmem:[#allocation5 + $0x10] sm:$0xff] %vm746_vm0, %v732_v46 }
 0x1fd   : > { %781 = vst.msk [vmem:[#allocation2 + $0x10] sm:$0xff] %vm746_vm0, %v732_v46  ;;  %747 = vst.msk [vmem:[#allocation4] sm:$0xff] %vm746_vm0, %v730_v49  ;;  %v705_v50 = vpop.xlane.xlu1 %704  ;;  %v701_v53 = vpop.xlane.xlu0 %700 }
 0x1fe   : > { %763 = vst.msk [vmem:[#allocation5] sm:$0xff] %vm746_vm0, %v730_v49  ;;  %779 = vst.msk [vmem:[#allocation2] sm:$0xff] %vm746_vm0, %v730_v49  ;;  %v733_v54 = vmul.f32 5.0, %v705_v50  ;;  %v731_v57 = vmul.f32 5.0, %v701_v53 }
 0x200   : > { %750 = vst.msk [vmem:[#allocation4 + $0x18] sm:$0xff] %vm746_vm0, %v733_v54  ;;  %766 = vst.msk [vmem:[#allocation5 + $0x18] sm:$0xff] %vm746_vm0, %v733_v54 }
 0x201   : > { %782 = vst.msk [vmem:[#allocation2 + $0x18] sm:$0xff] %vm746_vm0, %v733_v54  ;;  %748 = vst.msk [vmem:[#allocation4 + $0x8] sm:$0xff] %vm746_vm0, %v731_v57  ;;  %v709_v58 = vpop.xlane.xlu1 %708  ;;  %v707_v61 = vpop.xlane.xlu0 %706 }
 0x202   : > { %764 = vst.msk [vmem:[#allocation5 + $0x8] sm:$0xff] %vm746_vm0, %v731_v57  ;;  %780 = vst.msk [vmem:[#allocation2 + $0x8] sm:$0xff] %vm746_vm0, %v731_v57  ;;  %v735_v23 = vmul.f32 5.0, %v709_v58  ;;  %v734_v62 = vmul.f32 5.0, %v707_v61 }
 0x204   : > { %752 = vst.msk [vmem:[#allocation4 + $0x28] sm:$0xff] %vm746_vm0, %v735_v23  ;;  %768 = vst.msk [vmem:[#allocation5 + $0x28] sm:$0xff] %vm746_vm0, %v735_v23 }
 0x205   : > { %784 = vst.msk [vmem:[#allocation2 + $0x28] sm:$0xff] %vm746_vm0, %v735_v23  ;;  %751 = vst.msk [vmem:[#allocation4 + $0x20] sm:$0xff] %vm746_vm0, %v734_v62  ;;  %v713_v2 = vpop.xlane.xlu1 %712  ;;  %v711_v3 = vpop.xlane.xlu0 %710 }
 0x206   : > { %767 = vst.msk [vmem:[#allocation5 + $0x20] sm:$0xff] %vm746_vm0, %v734_v62  ;;  %783 = vst.msk [vmem:[#allocation2 + $0x20] sm:$0xff] %vm746_vm0, %v734_v62  ;;  %v737_v6 = vmul.f32 5.0, %v713_v2  ;;  %v736_v7 = vmul.f32 5.0, %v711_v3 }
 0x208   : > { %754 = vst.msk [vmem:[#allocation4 + $0x38] sm:$0xff] %vm746_vm0, %v737_v6  ;;  %770 = vst.msk [vmem:[#allocation5 + $0x38] sm:$0xff] %vm746_vm0, %v737_v6 }
 0x209   : > { %786 = vst.msk [vmem:[#allocation2 + $0x38] sm:$0xff] %vm746_vm0, %v737_v6  ;;  %753 = vst.msk [vmem:[#allocation4 + $0x30] sm:$0xff] %vm746_vm0, %v736_v7  ;;  %v717_v10 = vpop.xlane.xlu1 %716  ;;  %v715_v18 = vpop.xlane.xlu0 %714 }
 0x20a   : > { %769 = vst.msk [vmem:[#allocation5 + $0x30] sm:$0xff] %vm746_vm0, %v736_v7  ;;  %785 = vst.msk [vmem:[#allocation2 + $0x30] sm:$0xff] %vm746_vm0, %v736_v7  ;;  %v739_v11 = vmul.f32 5.0, %v717_v10  ;;  %v738_v19 = vmul.f32 5.0, %v715_v18 }
 0x20c   : > { %756 = vst.msk [vmem:[#allocation4 + $0x48] sm:$0xff] %vm746_vm0, %v739_v11  ;;  %772 = vst.msk [vmem:[#allocation5 + $0x48] sm:$0xff] %vm746_vm0, %v739_v11 }
 0x20d   : > { %788 = vst.msk [vmem:[#allocation2 + $0x48] sm:$0xff] %vm746_vm0, %v739_v11  ;;  %755 = vst.msk [vmem:[#allocation4 + $0x40] sm:$0xff] %vm746_vm0, %v738_v19  ;;  %v721_v14 = vpop.xlane.xlu1 %720  ;;  %v719_v17 = vpop.xlane.xlu0 %718 }
 0x20e   : > { %771 = vst.msk [vmem:[#allocation5 + $0x40] sm:$0xff] %vm746_vm0, %v738_v19  ;;  %787 = vst.msk [vmem:[#allocation2 + $0x40] sm:$0xff] %vm746_vm0, %v738_v19  ;;  %v741_v15 = vmul.f32 5.0, %v721_v14  ;;  %v740_v26 = vmul.f32 5.0, %v719_v17 }
 0x210   : > { %758 = vst.msk [vmem:[#allocation4 + $0x58] sm:$0xff] %vm746_vm0, %v741_v15  ;;  %774 = vst.msk [vmem:[#allocation5 + $0x58] sm:$0xff] %vm746_vm0, %v741_v15 }
 0x211   : > { %790 = vst.msk [vmem:[#allocation2 + $0x58] sm:$0xff] %vm746_vm0, %v741_v15  ;;  %757 = vst.msk [vmem:[#allocation4 + $0x50] sm:$0xff] %vm746_vm0, %v740_v26  ;;  %v725_v29 = vpop.xlane.xlu1 %724  ;;  %v723_v20 = vpop.xlane.xlu0 %722 }
 0x212   : > { %773 = vst.msk [vmem:[#allocation5 + $0x50] sm:$0xff] %vm746_vm0, %v740_v26  ;;  %789 = vst.msk [vmem:[#allocation2 + $0x50] sm:$0xff] %vm746_vm0, %v740_v26  ;;  %v743_v34 = vmul.f32 5.0, %v725_v29  ;;  %v742_v37 = vmul.f32 5.0, %v723_v20 }
 0x214   : > { %760 = vst.msk [vmem:[#allocation4 + $0x68] sm:$0xff] %vm746_vm0, %v743_v34  ;;  %776 = vst.msk [vmem:[#allocation5 + $0x68] sm:$0xff] %vm746_vm0, %v743_v34 }
 0x215   : > { %792 = vst.msk [vmem:[#allocation2 + $0x68] sm:$0xff] %vm746_vm0, %v743_v34  ;;  %759 = vst.msk [vmem:[#allocation4 + $0x60] sm:$0xff] %vm746_vm0, %v742_v37  ;;  %v729_v42 = vpop.xlane.xlu1 %728  ;;  %v727_v45 = vpop.xlane.xlu0 %726 }
 0x216   : > { %775 = vst.msk [vmem:[#allocation5 + $0x60] sm:$0xff] %vm746_vm0, %v742_v37  ;;  %791 = vst.msk [vmem:[#allocation2 + $0x60] sm:$0xff] %vm746_vm0, %v742_v37  ;;  %v745_v22 = vmul.f32 5.0, %v729_v42  ;;  %v744_v24 = vmul.f32 5.0, %v727_v45 }
 0x218   : > { %762 = vst.msk [vmem:[#allocation4 + $0x78] sm:$0xff] %vm746_vm0, %v745_v22  ;;  %778 = vst.msk [vmem:[#allocation5 + $0x78] sm:$0xff] %vm746_vm0, %v745_v22 }
 0x219   : > { %794 = vst.msk [vmem:[#allocation2 + $0x78] sm:$0xff] %vm746_vm0, %v745_v22  ;;  %761 = vst.msk [vmem:[#allocation4 + $0x70] sm:$0xff] %vm746_vm0, %v744_v24 }
 0x21a   : > { %777 = vst.msk [vmem:[#allocation5 + $0x70] sm:$0xff] %vm746_vm0, %v744_v24  ;;  %793 = vst.msk [vmem:[#allocation2 + $0x70] sm:$0xff] %vm746_vm0, %v744_v24 }
 0x21b PF: > { %2128 = vset.pattern.permute.xlu0 %v2480_v0  ;;  %s2482_s10 = smov 1   ;;  %2129 = vset.pattern.permute.xlu1 %v2480_v0  ;;  %v1073_v21 = vmax.f32 %v2805_v27, %v2809_v31  ;;  %v1079_v46 = vmax.f32 %v2821_v43, %v2825_v47  ;;  %v1076_v0 = vmax.f32 %v2813_v35, %v2817_v39  ;;  %s3571_s29 = sld [smem:[#allocation18_spill]]  ;;  %vm923_vm1 = vcmask 7168   ;;  %v812_v10 = vld [vmem:[#allocation5 + $0x8] sm:$0xff]  ;;  %v811_v18 = vld [vmem:[#allocation5] sm:$0xff]  ;;  %v813_v34 = vld [vmem:[#allocation5 + $0x10] sm:$0xff] }
 0x21c   : > { %863 = vrot.lane.b32.xlu1 %v2813_v35, %s2482_s10  ;;  %859 = vrot.lane.b32.xlu0 %v2805_v27, %s2482_s10  ;;  %v1082_v49 = vmax.f32 %v2829_v51, %v2833_v55  ;;  %v1085_v50 = vmax.f32 %v2837_v59, %v2841_v63  ;;  %v1088_v53 = vmax.f32 %v2845_v4, %v2849_v8  ;;  %v3049_v24 = vld [vmem:[#allocation2] sm:$0xff] }
 0x21d   : > { %v1091_v54 = vmax.f32 %v2853_v12, %v2857_v16  ;;  %v1094_v57 = vmax.f32 %v2861_v30, %v2865_v38  ;;  %v1097_v58 = vmax.f32 %v2807_v28, %v2811_v32  ;;  %v1100_v61 = vmax.f32 %v2815_v36, %v2819_v40 }
 0x21e   : > { %v1103_v23 = vmax.f32 %v2823_v44, %v2827_v48  ;;  %v1106_v62 = vmax.f32 %v2831_v52, %v2835_v56  ;;  %v1109_v2 = vmax.f32 %v2839_v60, %v2843_v1  ;;  %v1112_v3 = vmax.f32 %v2847_v5, %v2851_v9 }
 0x21f   : > { %v1115_v6 = vmax.f32 %v2855_v13, %v2859_v25  ;;  %v1118_v7 = vmax.f32 %v2863_v33, %v2867_v41 }
 0x220   : > { %865 = vrot.lane.b32.xlu1 %v2817_v39, %s2482_s10  ;;  %861 = vrot.lane.b32.xlu0 %v2809_v31, %s2482_s10 }
 0x221   : > { %s1900_s6 = sshll.u32 %s3571_s29, 8  ;;  %p1902_p0 = scmp.ne.s32.totalorder %s3571_s29, 3 }
 0x222   : > { %s989_s18 = sshra.s32 %s1900_s6, 7 }
 0x223   : > { %s1901_s13 = sshll.u32 %s989_s18, 3 }
 0x224   : > { %869 = vrot.lane.b32.xlu1 %v2825_v47, %s2482_s10  ;;  %867 = vrot.lane.b32.xlu0 %v2821_v43, %s2482_s10  ;;  %s3032_s4 = scalar_lea.vmem %s2749_s30, %s1901_s13 }
 0x243   : > { %1074 = vmax.xlane.f32.xlu0 %v1073_v21 }
 0x247   : > { %1080 = vmax.xlane.f32.xlu0 %v1079_v46 }
 0x248   : > { %1077 = vmax.xlane.f32.xlu1 %v1076_v0  ;;  %v3054_v0 = vld [vmem:[#allocation2 + $0x10] sm:$0xff] }
 0x24b   : > { %1083 = vmax.xlane.f32.xlu0 %v1082_v49  ;;  %v814_v49 = vld [vmem:[#allocation5 + $0x18] sm:$0xff] }
 0x24c   : > { %1086 = vmax.xlane.f32.xlu1 %v1085_v50  ;;  %v3061_v50 = vld [vmem:[#allocation2 + $0x8] sm:$0xff] }
 0x24f   : > { %1089 = vmax.xlane.f32.xlu0 %v1088_v53 }
 0x250   : > { %1092 = vmax.xlane.f32.xlu1 %v1091_v54 }
 0x253   : > { %1095 = vmax.xlane.f32.xlu0 %v1094_v57 }
 0x254   : > { %1098 = vmax.xlane.f32.xlu1 %v1097_v58 }
 0x257   : > { %1101 = vmax.xlane.f32.xlu0 %v1100_v61  ;;  %v3069_v61 = vld [vmem:[#allocation2 + $0x18] sm:$0xff] }
 0x258   : > { %1104 = vmax.xlane.f32.xlu1 %v1103_v23  ;;  %v3165_v23 = vld [vmem:[#allocation2 + $0x68] sm:$0xff] }
 0x259   : > { %3580 = vst [vmem:[#allocation33_spill] sm:$0xff] %v3165_v23 }
 0x25b   : > { %1107 = vmax.xlane.f32.xlu0 %v1106_v62  ;;  %v3075_v62 = vld [vmem:[#allocation2 + $0x20] sm:$0xff] }
 0x25c   : > { %1110 = vmax.xlane.f32.xlu1 %v1109_v2 }
 0x25f   : > { %1113 = vmax.xlane.f32.xlu0 %v1112_v3 }
 0x260   : > { %1116 = vmax.xlane.f32.xlu1 %v1115_v6 }
 0x263   : > { %1119 = vmax.xlane.f32.xlu0 %v1118_v7 }
 0x271   : > { %871 = vrot.lane.b32.xlu1 %v2829_v51, %s2482_s10 }
 0x275   : > { %875 = vrot.lane.b32.xlu1 %v2837_v59, %s2482_s10 }
 0x279   : > { %873 = vrot.lane.b32.xlu0 %v2833_v55, %s2482_s10  ;;  %877 = vrot.lane.b32.xlu1 %v2841_v63, %s2482_s10 }
 0x27d   : > { %879 = vrot.lane.b32.xlu0 %v2845_v4, %s2482_s10  ;;  %881 = vrot.lane.b32.xlu1 %v2849_v8, %s2482_s10 }
 0x281   : > { %883 = vrot.lane.b32.xlu0 %v2853_v12, %s2482_s10  ;;  %885 = vrot.lane.b32.xlu1 %v2857_v16, %s2482_s10 }
 0x285   : > { %889 = vrot.lane.b32.xlu0 %v2865_v38, %s2482_s10  ;;  %887 = vrot.lane.b32.xlu1 %v2861_v30, %s2482_s10 }
 0x289   : > { %891 = vrot.lane.b32.xlu1 %v2807_v28, %s2482_s10 }
 0x28e   : > { %v864_v11 = vpop.permute.xlu1 %863  ;;  %v860_v19 = vpop.permute.xlu0 %859 }
 0x28f   : > { %v973_v14 = vsel %vm923_vm1, %v812_v10, %v864_v11  ;;  %v972_v17 = vsel %vm923_vm1, %v811_v18, %v860_v19  ;;  %v3085_v10 = vld [vmem:[#allocation2 + $0x28] sm:$0xff] }
 0x290   : > { %995 = vst [vmem:[%s3032_s4 + $0x48] sm:$0xff] %v973_v14  ;;  %993 = vst [vmem:[%s3032_s4] sm:$0xff] %v972_v17 }
 0x292   : > { %v866_v15 = vpop.permute.xlu1 %865  ;;  %v862_v26 = vpop.permute.xlu0 %861 }
 0x293   : > { %v925_v29 = vsel %vm923_vm1, %v864_v11, %v866_v15  ;;  %1042 = vst.msk [vmem:[#allocation5 + $0x8] sm:$0xff] %vm923_vm1, %v866_v15  ;;  %v924_v20 = vsel %vm923_vm1, %v860_v19, %v862_v26  ;;  %1041 = vst.msk [vmem:[#allocation5] sm:$0xff] %vm923_vm1, %v862_v26  ;;  %v3095_v19 = vld [vmem:[#allocation2 + $0x30] sm:$0xff] }
 0x294   : > { %996 = vst [vmem:[%s3032_s4 + $0x50] sm:$0xff] %v925_v29  ;;  %994 = vst [vmem:[%s3032_s4 + $0x8] sm:$0xff] %v924_v20  ;;  %v3105_v29 = vld [vmem:[#allocation2 + $0x38] sm:$0xff] }
 0x296   : > { %v870_v37 = vpop.permute.xlu1 %869  ;;  %v868_v42 = vpop.permute.xlu0 %867 }
 0x297   : > { %1043 = vst.msk [vmem:[#allocation5 + $0x10] sm:$0xff] %vm923_vm1, %v870_v37  ;;  %v926_v45 = vsel %vm923_vm1, %v868_v42, %v870_v37  ;;  %v974_v22 = vsel %vm923_vm1, %v813_v34, %v868_v42  ;;  %v3115_v37 = vld [vmem:[#allocation2 + $0x40] sm:$0xff]  ;;  %v3175_v34 = vld [vmem:[#allocation2 + $0x70] sm:$0xff] }
 0x298   : > { %997 = vst [vmem:[%s3032_s4 + $0x90] sm:$0xff] %v974_v22  ;;  %998 = vst [vmem:[%s3032_s4 + $0x98] sm:$0xff] %v926_v45  ;;  %v3145_v45 = vld [vmem:[#allocation2 + $0x58] sm:$0xff] }
 0x299   : > { %3572 = vst [vmem:[#allocation25_spill] sm:$0xff] %v3115_v37  ;;  %3576 = vst [vmem:[#allocation29_spill] sm:$0xff] %v3145_v45 }
 0x29a   : > { %3582 = vst [vmem:[#allocation35_spill] sm:$0xff] %v3175_v34 }
 0x2cc   : > { %v1075_v21 = vpop.xlane.xlu0 %1074 }
 0x2cd   : > { %v3052_v46 = vmax.f32 %v3049_v24, %v1075_v21 }
 0x2cf   : > { %1473 = vst.msk [vmem:[#allocation2] sm:$0xff] %vm923_vm1, %v3052_v46  ;;  %1219 = vperm.xlu0 %2128, %v3052_v46  }
 0x2d0   : > { %v1081_v53 = vpop.xlane.xlu0 %1080 }
 0x2d1   : > { %v3064_v54 = vmax.f32 %v3054_v0, %v1081_v53  ;;  %v1078_v57 = vpop.xlane.xlu1 %1077  ;;  %v3125_v53 = vld [vmem:[#allocation2 + $0x48] sm:$0xff] }
 0x2d2   : > { %v3067_v58 = vmax.f32 %v3061_v50, %v1078_v57 }
 0x2d3   : > { %1475 = vst.msk [vmem:[#allocation2 + $0x10] sm:$0xff] %vm923_vm1, %v3064_v54 }
 0x2d4   : > { %1474 = vst.msk [vmem:[#allocation2 + $0x8] sm:$0xff] %vm923_vm1, %v3067_v58  ;;  %1224 = vperm.xlu1 %2129, %v3067_v58   ;;  %v1084_v3 = vpop.xlane.xlu0 %1083 }
 0x2d5   : > { %v3083_v6 = vmax.f32 %v3069_v61, %v1084_v3  ;;  %v1087_v7 = vpop.xlane.xlu1 %1086 }
 0x2d6   : > { %v3088_v18 = vmax.f32 %v3075_v62, %v1087_v7  ;;  %v3135_v7 = vld [vmem:[#allocation2 + $0x50] sm:$0xff] }
 0x2d7   : > { %1476 = vst.msk [vmem:[#allocation2 + $0x18] sm:$0xff] %vm923_vm1, %v3083_v6  ;;  %1234 = vperm.xlu0 %2128, %v3083_v6   ;;  %3574 = vst [vmem:[#allocation27_spill] sm:$0xff] %v3135_v7 }
 0x2d8   : > { %1229 = vperm.xlu1 %2129, %v3064_v54   ;;  %v1090_v14 = vpop.xlane.xlu0 %1089  ;;  %1477 = vst.msk [vmem:[#allocation2 + $0x20] sm:$0xff] %vm923_vm1, %v3088_v18 }
 0x2d9   : > { %v3103_v15 = vmax.f32 %v3085_v10, %v1090_v14  ;;  %v1093_v26 = vpop.xlane.xlu1 %1092 }
 0x2da   : > { %v3108_v20 = vmax.f32 %v3095_v19, %v1093_v26  ;;  %v3155_v26 = vld [vmem:[#allocation2 + $0x60] sm:$0xff] }
 0x2db   : > { %1478 = vst.msk [vmem:[#allocation2 + $0x28] sm:$0xff] %vm923_vm1, %v3103_v15  ;;  %1244 = vperm.xlu0 %2128, %v3103_v15   ;;  %3578 = vst [vmem:[#allocation31_spill] sm:$0xff] %v3155_v26 }
 0x2dc   : > { %1239 = vperm.xlu1 %2129, %v3088_v18   ;;  %v1096_v42 = vpop.xlane.xlu0 %1095  ;;  %1479 = vst.msk [vmem:[#allocation2 + $0x30] sm:$0xff] %vm923_vm1, %v3108_v20 }
 0x2dd   : > { %v3123_v22 = vmax.f32 %v3105_v29, %v1096_v42  ;;  %v1099_v21 = vpop.xlane.xlu1 %1098 }
 0x2de   : > { %v3128_v57 = vmax.f32 %v3115_v37, %v1099_v21 }
 0x2df   : > { %1480 = vst.msk [vmem:[#allocation2 + $0x38] sm:$0xff] %vm923_vm1, %v3123_v22  ;;  %1254 = vperm.xlu0 %2128, %v3123_v22  }
 0x2e0   : > { %3573 = vst [vmem:[#allocation26_spill] sm:$0xff] %v3128_v57  ;;  %1249 = vperm.xlu1 %2129, %v3108_v20   ;;  %v1102_v14 = vpop.xlane.xlu0 %1101  ;;  %1481 = vst.msk [vmem:[#allocation2 + $0x40] sm:$0xff] %vm923_vm1, %v3128_v57 }
 0x2e1   : > { %v3143_v42 = vmax.f32 %v3125_v53, %v1102_v14  ;;  %v1105_v21 = vpop.xlane.xlu1 %1104 }
 0x2e2   : > { %v3148_v3 = vmax.f32 %v3135_v7, %v1105_v21  ;;  %v3185_v7 = vld [vmem:[#allocation2 + $0x78] sm:$0xff] }
 0x2e3   : > { %3575 = vst [vmem:[#allocation28_spill] sm:$0xff] %v3143_v42  ;;  %1482 = vst.msk [vmem:[#allocation2 + $0x48] sm:$0xff] %vm923_vm1, %v3143_v42  ;;  %1264 = vperm.xlu0 %2128, %v3143_v42  }
 0x2e4   : > { %3577 = vst [vmem:[#allocation30_spill] sm:$0xff] %v3148_v3  ;;  %1259 = vperm.xlu1 %2129, %v3128_v57   ;;  %v1108_v14 = vpop.xlane.xlu0 %1107  ;;  %1483 = vst.msk [vmem:[#allocation2 + $0x50] sm:$0xff] %vm923_vm1, %v3148_v3 }
 0x2e5   : > { %v3163_v21 = vmax.f32 %v3145_v45, %v1108_v14  ;;  %v1111_v17 = vpop.xlane.xlu1 %1110  ;;  %3584 = vst [vmem:[#allocation37_spill] sm:$0xff] %v3185_v7 }
 0x2e6   : > { %v3168_v11 = vmax.f32 %v3155_v26, %v1111_v17  ;;  %v815_v26 = vld [vmem:[#allocation5 + $0x20] sm:$0xff] }
 0x2e7   : > { %3579 = vst [vmem:[#allocation32_spill] sm:$0xff] %v3163_v21  ;;  %1484 = vst.msk [vmem:[#allocation2 + $0x58] sm:$0xff] %vm923_vm1, %v3163_v21  ;;  %1274 = vperm.xlu0 %2128, %v3163_v21  }
 0x2e8   : > { %3581 = vst [vmem:[#allocation34_spill] sm:$0xff] %v3168_v11  ;;  %1269 = vperm.xlu1 %2129, %v3148_v3   ;;  %v1114_v14 = vpop.xlane.xlu0 %1113  ;;  %1485 = vst.msk [vmem:[#allocation2 + $0x60] sm:$0xff] %vm923_vm1, %v3168_v11 }
 0x2e9   : > { %v3183_v17 = vmax.f32 %v3165_v23, %v1114_v14  ;;  %v1117_v2 = vpop.xlane.xlu1 %1116 }
 0x2ea   : > { %v3188_v21 = vmax.f32 %v3175_v34, %v1117_v2 }
 0x2eb   : > { %3583 = vst [vmem:[#allocation36_spill] sm:$0xff] %v3183_v17  ;;  %1486 = vst.msk [vmem:[#allocation2 + $0x68] sm:$0xff] %vm923_vm1, %v3183_v17  ;;  %1284 = vperm.xlu0 %2128, %v3183_v17  }
 0x2ec   : > { %3585 = vst [vmem:[#allocation38_spill] sm:$0xff] %v3188_v21  ;;  %1279 = vperm.xlu1 %2129, %v3168_v11   ;;  %v1120_v14 = vpop.xlane.xlu0 %1119  ;;  %1487 = vst.msk [vmem:[#allocation2 + $0x70] sm:$0xff] %vm923_vm1, %v3188_v21 }
 0x2ed   : > { %v3201_v2 = vmax.f32 %v3185_v7, %v1120_v14  ;;  %v872_v3 = vpop.permute.xlu1 %871 }
 0x2ee   : > { %v975_v23 = vsel %vm923_vm1, %v814_v49, %v872_v3 }
 0x2ef   : > { %3586 = vst [vmem:[#allocation39_spill] sm:$0xff] %v3201_v2  ;;  %1488 = vst.msk [vmem:[#allocation2 + $0x78] sm:$0xff] %vm923_vm1, %v3201_v2  ;;  %1294 = vperm.xlu0 %2128, %v3201_v2  }
 0x2f0   : > { %999 = vst [vmem:[%s3032_s4 + $0xd8] sm:$0xff] %v975_v23  ;;  %1289 = vperm.xlu1 %2129, %v3188_v21   ;;  %v874_v34 = vpop.permute.xlu0 %873  ;;  %v816_v23 = vld [vmem:[#allocation5 + $0x28] sm:$0xff] }
 0x2f1   : > { %v876_v14 = vpop.permute.xlu1 %875  ;;  %v927_v11 = vsel %vm923_vm1, %v872_v3, %v874_v34  ;;  %1044 = vst.msk [vmem:[#allocation5 + $0x18] sm:$0xff] %vm923_vm1, %v874_v34 }
 0x2f2   : > { %v976_v49 = vsel %vm923_vm1, %v815_v26, %v876_v14  ;;  %1000 = vst [vmem:[%s3032_s4 + $0xe0] sm:$0xff] %v927_v11  ;;  %v817_v11 = vld [vmem:[#allocation5 + $0x30] sm:$0xff] }
 0x2f3   : > { %893 = vrot.lane.b32.xlu0 %v2811_v32, %s2482_s10  ;;  %1001 = vst [vmem:[%s3032_s4 + $0x120] sm:$0xff] %v976_v49 }
 0x2f4   : > { %895 = vrot.lane.b32.xlu1 %v2815_v36, %s2482_s10  ;;  %v880_v17 = vpop.permute.xlu0 %879 }
 0x2f5   : > { %v878_v21 = vpop.permute.xlu1 %877  ;;  %v977_v2 = vsel %vm923_vm1, %v816_v23, %v880_v17 }
 0x2f6   : > { %v928_v3 = vsel %vm923_vm1, %v876_v14, %v878_v21  ;;  %1045 = vst.msk [vmem:[#allocation5 + $0x20] sm:$0xff] %vm923_vm1, %v878_v21  ;;  %1003 = vst [vmem:[%s3032_s4 + $0x168] sm:$0xff] %v977_v2  ;;  %v818_v21 = vld [vmem:[#allocation5 + $0x38] sm:$0xff] }
 0x2f7   : > { %897 = vrot.lane.b32.xlu0 %v2819_v40, %s2482_s10  ;;  %1002 = vst [vmem:[%s3032_s4 + $0x128] sm:$0xff] %v928_v3 }
 0x2f8   : > { %899 = vrot.lane.b32.xlu1 %v2823_v44, %s2482_s10  ;;  %v884_v34 = vpop.permute.xlu0 %883 }
 0x2f9   : > { %v882_v26 = vpop.permute.xlu1 %881  ;;  %v978_v49 = vsel %vm923_vm1, %v817_v11, %v884_v34 }
 0x2fa   : > { %1046 = vst.msk [vmem:[#allocation5 + $0x28] sm:$0xff] %vm923_vm1, %v882_v26  ;;  %v929_v14 = vsel %vm923_vm1, %v880_v17, %v882_v26  ;;  %1005 = vst [vmem:[%s3032_s4 + $0x1b0] sm:$0xff] %v978_v49  ;;  %v819_v49 = vld [vmem:[#allocation5 + $0x40] sm:$0xff] }
 0x2fb   : > { %901 = vrot.lane.b32.xlu0 %v2827_v48, %s2482_s10  ;;  %1004 = vst [vmem:[%s3032_s4 + $0x170] sm:$0xff] %v929_v14 }
 0x2fc   : > { %903 = vrot.lane.b32.xlu1 %v2831_v52, %s2482_s10  ;;  %v890_v2 = vpop.permute.xlu0 %889 }
 0x2fd   : > { %v886_v23 = vpop.permute.xlu1 %885  ;;  %1048 = vst.msk [vmem:[#allocation5 + $0x38] sm:$0xff] %vm923_vm1, %v890_v2 }
 0x2fe   : > { %1047 = vst.msk [vmem:[#allocation5 + $0x30] sm:$0xff] %vm923_vm1, %v886_v23  ;;  %v930_v17 = vsel %vm923_vm1, %v884_v34, %v886_v23 }
 0x2ff   : > { %905 = vrot.lane.b32.xlu0 %v2835_v56, %s2482_s10  ;;  %1006 = vst [vmem:[%s3032_s4 + $0x1b8] sm:$0xff] %v930_v17 }
 0x300   : > { %909 = vrot.lane.b32.xlu1 %v2843_v1, %s2482_s10 }
 0x301   : > { %v888_v3 = vpop.permute.xlu1 %887 }
 0x302   : > { %v979_v11 = vsel %vm923_vm1, %v818_v21, %v888_v3  ;;  %v931_v26 = vsel %vm923_vm1, %v888_v3, %v890_v2 }
 0x303   : > { %907 = vrot.lane.b32.xlu0 %v2839_v60, %s2482_s10  ;;  %1007 = vst [vmem:[%s3032_s4 + $0x1f8] sm:$0xff] %v979_v11  ;;  %1008 = vst [vmem:[%s3032_s4 + $0x200] sm:$0xff] %v931_v26 }
 0x304   : > { %911 = vrot.lane.b32.xlu1 %v2847_v5, %s2482_s10 }
 0x305   : > { %v3254_v34 = vpop.permute.xlu1 %891 }
 0x306   : > { %v980_v14 = vsel %vm923_vm1, %v819_v49, %v3254_v34 }
 0x307   : > { %913 = vrot.lane.b32.xlu0 %v2851_v9, %s2482_s10  ;;  %1009 = vst [vmem:[%s3032_s4 + $0x240] sm:$0xff] %v980_v14 }
 0x308   : > { %915 = vrot.lane.b32.xlu1 %v2855_v13, %s2482_s10 }
 0x30b   : > { %917 = vrot.lane.b32.xlu0 %v2859_v25, %s2482_s10 }
 0x34a   : > { %v1220_v21 = vpop.permute.xlu0 %1219 }
 0x34b   : > { %v1297_v2 = vsub.f32 %v2805_v27, %v1220_v21  ;;  %v1298_v23 = vsub.f32 %v2809_v31, %v1220_v21 }
 0x34d   : > { %v1329_v17 = vmul.f32 1.442695, %v1297_v2  ;;  %v1331_v3 = vmul.f32 1.442695, %v1298_v23 }
 0x34f   : > { %2130 = vpow2.f32 %v1329_v17  ;;  %v1225_v11 = vpop.permute.xlu1 %1224 }
 0x350   : > { %2132 = vpow2.f32 %v1331_v3  ;;  %v1299_v26 = vsub.f32 %v2813_v35, %v1225_v11  ;;  %v1300_v49 = vsub.f32 %v2817_v39, %v1225_v11 }
 0x352   : > { %v1333_v14 = vmul.f32 1.442695, %v1299_v26  ;;  %v1335_v7 = vmul.f32 1.442695, %v1300_v49  ;;  %v1235_v45 = vpop.permute.xlu0 %1234 }
 0x353   : > { %v1303_v57 = vsub.f32 %v2829_v51, %v1235_v45  ;;  %v1304_v37 = vsub.f32 %v2833_v55, %v1235_v45  ;;  %v1230_v42 = vpop.permute.xlu1 %1229 }
 0x354   : > { %2134 = vpow2.f32 %v1333_v14  ;;  %v1301_v27 = vsub.f32 %v2821_v43, %v1230_v42  ;;  %v1302_v31 = vsub.f32 %v2825_v47, %v1230_v42 }
 0x355   : > { %2136 = vpow2.f32 %v1335_v7  ;;  %v1341_v21 = vmul.f32 1.442695, %v1303_v57  ;;  %v1343_v2 = vmul.f32 1.442695, %v1304_v37 }
 0x356   : > { %v1337_v23 = vmul.f32 1.442695, %v1301_v27  ;;  %v1339_v35 = vmul.f32 1.442695, %v1302_v31  ;;  %v1245_v17 = vpop.permute.xlu0 %1244 }
 0x357   : > { %2138 = vpow2.f32 %v1341_v21  ;;  %v1307_v39 = vsub.f32 %v2845_v4, %v1245_v17  ;;  %v1308_v3 = vsub.f32 %v2849_v8, %v1245_v17  ;;  %v1240_v51 = vpop.permute.xlu1 %1239 }
 0x358   : > { %2140 = vpow2.f32 %v1343_v2  ;;  %v1305_v55 = vsub.f32 %v2837_v59, %v1240_v51  ;;  %v1306_v45 = vsub.f32 %v2841_v63, %v1240_v51 }
 0x359   : > { %2142 = vpow2.f32 %v1337_v23  ;;  %v1349_v43 = vmul.f32 1.442695, %v1307_v39  ;;  %v1351_v47 = vmul.f32 1.442695, %v1308_v3 }
 0x35a   : > { %2144 = vpow2.f32 %v1339_v35  ;;  %v1345_v57 = vmul.f32 1.442695, %v1305_v55  ;;  %v1347_v37 = vmul.f32 1.442695, %v1306_v45  ;;  %v1255_v7 = vpop.permute.xlu0 %1254 }
 0x35b   : > { %2146 = vpow2.f32 %v1349_v43  ;;  %v1311_v42 = vsub.f32 %v2861_v30, %v1255_v7  ;;  %v1312_v4 = vsub.f32 %v2865_v38, %v1255_v7  ;;  %v1250_v11 = vpop.permute.xlu1 %1249 }
 0x35c   : > { %v2131_v8 = vpop.eup %2130  ;;  %2148 = vpow2.f32 %v1351_v47  ;;  %v1309_v26 = vsub.f32 %v2853_v12, %v1250_v11  ;;  %v1310_v59 = vsub.f32 %v2857_v16, %v1250_v11 }
 0x35d   : > { %v2133_v63 = vpop.eup %2132  ;;  %2150 = vpow2.f32 %v1345_v57  ;;  %v1357_v49 = vmul.f32 1.442695, %v1311_v42  ;;  %v1359_v14 = vmul.f32 1.442695, %v1312_v4 }
 0x35e   : > { %2152 = vpow2.f32 %v1347_v37  ;;  %v1353_v27 = vmul.f32 1.442695, %v1309_v26  ;;  %v1355_v31 = vmul.f32 1.442695, %v1310_v59  ;;  %v1265_v21 = vpop.permute.xlu0 %1264  ;;  %v1393_v2 = vadd.f32 %v2133_v63, %v2131_v8 }
 0x35f   : > { %2154 = vpow2.f32 %v1357_v49  ;;  %v1315_v30 = vsub.f32 %v2815_v36, %v1265_v21  ;;  %v1316_v38 = vsub.f32 %v2819_v40, %v1265_v21  ;;  %v1260_v23 = vpop.permute.xlu1 %1259 }
 0x360   : > { %2156 = vpow2.f32 %v1359_v14  ;;  %v1313_v12 = vsub.f32 %v2807_v28, %v1260_v23  ;;  %v1314_v16 = vsub.f32 %v2811_v32, %v1260_v23  ;;  %1394 = vadd.xlane.f32.xlu1 %v1393_v2 }
 0x361   : > { %v2135_v35 = vpop.eup %2134  ;;  %2158 = vpow2.f32 %v1353_v27  ;;  %v1365_v17 = vmul.f32 1.442695, %v1315_v30  ;;  %v1367_v39 = vmul.f32 1.442695, %v1316_v38 }
 0x362   : > { %v2137_v3 = vpop.eup %2136  ;;  %2160 = vpow2.f32 %v1355_v31  ;;  %v1361_v51 = vmul.f32 1.442695, %v1313_v12  ;;  %v1363_v55 = vmul.f32 1.442695, %v1314_v16  ;;  %v1275_v45 = vpop.permute.xlu0 %1274 }
 0x363   : > { %2162 = vpow2.f32 %v1365_v17  ;;  %v1319_v36 = vsub.f32 %v2831_v52, %v1275_v45  ;;  %v1320_v40 = vsub.f32 %v2835_v56, %v1275_v45  ;;  %v1270_v43 = vpop.permute.xlu1 %1269  ;;  %v1396_v47 = vadd.f32 %v2137_v3, %v2135_v35 }
 0x364   : > { %v2139_v28 = vpop.eup %2138  ;;  %2164 = vpow2.f32 %v1367_v39  ;;  %v1317_v32 = vsub.f32 %v2823_v44, %v1270_v43  ;;  %v1318_v57 = vsub.f32 %v2827_v48, %v1270_v43 }
 0x365   : > { %v2141_v37 = vpop.eup %2140  ;;  %2166 = vpow2.f32 %v1361_v51  ;;  %v1373_v7 = vmul.f32 1.442695, %v1319_v36  ;;  %v1375_v42 = vmul.f32 1.442695, %v1320_v40  ;;  %1397 = vadd.xlane.f32.xlu0 %v1396_v47  ;;  %v820_v36 = vld [vmem:[#allocation5 + $0x48] sm:$0xff] }
 0x366   : > { %v2143_v4 = vpop.eup %2142  ;;  %2168 = vpow2.f32 %v1363_v55  ;;  %v1369_v11 = vmul.f32 1.442695, %v1317_v32  ;;  %v1371_v8 = vmul.f32 1.442695, %v1318_v57  ;;  %v1285_v52 = vpop.permute.xlu0 %1284  ;;  %v1402_v26 = vadd.f32 %v2141_v37, %v2139_v28 }
 0x367   : > { %v2145_v56 = vpop.eup %2144  ;;  %2170 = vpow2.f32 %v1373_v7  ;;  %v1323_v59 = vsub.f32 %v2847_v5, %v1285_v52  ;;  %v1324_v63 = vsub.f32 %v2851_v9, %v1285_v52  ;;  %v1280_v44 = vpop.permute.xlu1 %1279 }
 0x368   : > { %v2147_v49 = vpop.eup %2146  ;;  %2172 = vpow2.f32 %v1375_v42  ;;  %v1321_v48 = vsub.f32 %v2839_v60, %v1280_v44  ;;  %v1322_v14 = vsub.f32 %v2843_v1, %v1280_v44  ;;  %1403 = vadd.xlane.f32.xlu1 %v1402_v26  ;;  %v1399_v27 = vadd.f32 %v2145_v56, %v2143_v4 }
 0x369   : > { %v2149_v31 = vpop.eup %2148  ;;  %2174 = vpow2.f32 %v1369_v11  ;;  %v1381_v21 = vmul.f32 1.442695, %v1323_v59  ;;  %v1383_v2 = vmul.f32 1.442695, %v1324_v63  ;;  %v821_v11 = vld [vmem:[#allocation5 + $0x50] sm:$0xff] }
 0x36a   : > { %v2151_v30 = vpop.eup %2150  ;;  %2176 = vpow2.f32 %v1371_v8  ;;  %v1377_v38 = vmul.f32 1.442695, %v1321_v48  ;;  %v1379_v23 = vmul.f32 1.442695, %v1322_v14  ;;  %1400 = vadd.xlane.f32.xlu0 %v1399_v27  ;;  %v1295_v5 = vpop.permute.xlu0 %1294  ;;  %v1408_v9 = vadd.f32 %v2149_v31, %v2147_v49  ;;  %v822_v14 = vld [vmem:[#allocation5 + $0x58] sm:$0xff] }
 0x36b   : > { %v2153_v12 = vpop.eup %2152  ;;  %2178 = vpow2.f32 %v1381_v21  ;;  %v1327_v16 = vsub.f32 %v2863_v33, %v1295_v5  ;;  %v1328_v60 = vsub.f32 %v2867_v41, %v1295_v5  ;;  %v1290_v1 = vpop.permute.xlu1 %1289 }
 0x36c   : > { %v2155_v35 = vpop.eup %2154  ;;  %2180 = vpow2.f32 %v1383_v2  ;;  %v1325_v17 = vsub.f32 %v2855_v13, %v1290_v1  ;;  %v1326_v39 = vsub.f32 %v2859_v25, %v1290_v1  ;;  %1409 = vadd.xlane.f32.xlu1 %v1408_v9  ;;  %v1405_v3 = vadd.f32 %v2153_v12, %v2151_v30 }
 0x36d   : > { %v2157_v51 = vpop.eup %2156  ;;  %2182 = vpow2.f32 %v1377_v38  ;;  %v1389_v55 = vmul.f32 1.442695, %v1327_v16  ;;  %v1391_v45 = vmul.f32 1.442695, %v1328_v60  ;;  %v823_v16 = vld [vmem:[#allocation5 + $0x60] sm:$0xff] }
 0x36e   : > { %v2159_v40 = vpop.eup %2158  ;;  %2184 = vpow2.f32 %v1379_v23  ;;  %v1385_v43 = vmul.f32 1.442695, %v1325_v17  ;;  %v1387_v47 = vmul.f32 1.442695, %v1326_v39  ;;  %1406 = vadd.xlane.f32.xlu0 %v1405_v3  ;;  %v894_v28 = vpop.permute.xlu0 %893  ;;  %v1414_v32 = vadd.f32 %v2157_v51, %v2155_v35 }
 0x36f   : > { %v2161_v57 = vpop.eup %2160  ;;  %2186 = vpow2.f32 %v1389_v55  ;;  %v932_v13 = vsel %vm923_vm1, %v3254_v34, %v894_v28  ;;  %1049 = vst.msk [vmem:[#allocation5 + $0x40] sm:$0xff] %vm923_vm1, %v894_v28  ;;  %v896_v25 = vpop.permute.xlu1 %895 }
 0x370   : > { %v2163_v37 = vpop.eup %2162  ;;  %2188 = vpow2.f32 %v1391_v45  ;;  %1010 = vst [vmem:[%s3032_s4 + $0x248] sm:$0xff] %v932_v13  ;;  %1415 = vadd.xlane.f32.xlu1 %v1414_v32  ;;  %v1411_v7 = vadd.f32 %v2161_v57, %v2159_v40  ;;  %v981_v42 = vsel %vm923_vm1, %v820_v36, %v896_v25  ;;  %v824_v36 = vld [vmem:[#allocation5 + $0x68] sm:$0xff] }
 0x371   : > { %v2165_v4 = vpop.eup %2164  ;;  %2190 = vpow2.f32 %v1385_v43  ;;  %1011 = vst [vmem:[%s3032_s4 + $0x288] sm:$0xff] %v981_v42 }
 0x372   : > { %v2167_v8 = vpop.eup %2166  ;;  %2192 = vpow2.f32 %v1387_v47  ;;  %1412 = vadd.xlane.f32.xlu0 %v1411_v7  ;;  %v1420_v34 = vadd.f32 %v2165_v4, %v2163_v37  ;;  %v898_v52 = vpop.permute.xlu0 %897  ;;  %v825_v7 = vld [vmem:[#allocation5 + $0x70] sm:$0xff] }
 0x373   : > { %v2169_v26 = vpop.eup %2168  ;;  %v933_v56 = vsel %vm923_vm1, %v896_v25, %v898_v52  ;;  %1050 = vst.msk [vmem:[#allocation5 + $0x48] sm:$0xff] %vm923_vm1, %v898_v52  ;;  %v900_v59 = vpop.permute.xlu1 %899 }
 0x374   : > { %v2171_v63 = vpop.eup %2170  ;;  %1421 = vadd.xlane.f32.xlu1 %v1420_v34  ;;  %v1417_v44 = vadd.f32 %v2169_v26, %v2167_v8  ;;  %1012 = vst [vmem:[%s3032_s4 + $0x290] sm:$0xff] %v933_v56  ;;  %v982_v49 = vsel %vm923_vm1, %v821_v11, %v900_v59  ;;  %v3587_v26 = vsub.f32 %v3049_v24, %v3052_v46 }
 0x375   : > { %v2173_v48 = vpop.eup %2172  ;;  %1013 = vst [vmem:[%s3032_s4 + $0x2d0] sm:$0xff] %v982_v49  ;;  %v3592_v46 = vsub.f32 %v3075_v62, %v3088_v18 }
 0x376   : > { %v2175_v27 = vpop.eup %2174  ;;  %1418 = vadd.xlane.f32.xlu0 %v1417_v44  ;;  %v1426_v31 = vadd.f32 %v2173_v48, %v2171_v63  ;;  %v902_v21 = vpop.permute.xlu0 %901  ;;  %v1169_v56 = vmul.f32 1.442695, %v3587_v26  ;;  %v3589_v44 = vsub.f32 %v3069_v61, %v3083_v6 }
 0x377   : > { %v2177_v2 = vpop.eup %2176  ;;  %v934_v30 = vsel %vm923_vm1, %v900_v59, %v902_v21  ;;  %1051 = vst.msk [vmem:[#allocation5 + $0x50] sm:$0xff] %vm923_vm1, %v902_v21  ;;  %v904_v38 = vpop.permute.xlu1 %903  ;;  %v3588_v59 = vsub.f32 %v3061_v50, %v3067_v58  ;;  %v1177_v50 = vmul.f32 1.442695, %v3592_v46  ;;  %v3593_v58 = vsub.f32 %v3105_v29, %v3123_v22  ;;  %v3597_v21 = vld [vmem:[#allocation25_spill] sm:$0xff] }
 0x378   : > { %v2179_v23 = vpop.eup %2178  ;;  %1427 = vadd.xlane.f32.xlu1 %v1426_v31  ;;  %v1423_v5 = vadd.f32 %v2177_v2, %v2175_v27  ;;  %1014 = vst [vmem:[%s3032_s4 + $0x2d8] sm:$0xff] %v934_v30  ;;  %v983_v9 = vsel %vm923_vm1, %v822_v14, %v904_v38  ;;  %2194 = vpow2.f32 %v1169_v56  ;;  %v1175_v49 = vmul.f32 1.442695, %v3589_v44  ;;  %v1137_v14 = vld [vmem:[#allocation3] sm:$0xff]  ;;  %v3598_v2 = vld [vmem:[#allocation26_spill] sm:$0xff] }
 0x379   : > { %v2181_v12 = vpop.eup %2180  ;;  %1015 = vst [vmem:[%s3032_s4 + $0x318] sm:$0xff] %v983_v9  ;;  %v1171_v63 = vmul.f32 1.442695, %v3588_v59  ;;  %v1183_v61 = vmul.f32 1.442695, %v3593_v58  ;;  %v3599_v29 = vsub.f32 %v3597_v21, %v3598_v2  ;;  %v1145_v2 = vld [vmem:[#allocation3 + $0x40] sm:$0xff] }
 0x37a   : > { %v2183_v60 = vpop.eup %2182  ;;  %1424 = vadd.xlane.f32.xlu0 %v1423_v5  ;;  %v1432_v1 = vadd.f32 %v2181_v12, %v2179_v23  ;;  %v906_v35 = vpop.permute.xlu0 %905  ;;  %v3600_v23 = vld [vmem:[#allocation29_spill] sm:$0xff]  ;;  %v3601_v5 = vld [vmem:[#allocation32_spill] sm:$0xff]  ;;  %v1140_v12 = vld [vmem:[#allocation3 + $0x18] sm:$0xff] }
 0x37b   : > { %v2185_v17 = vpop.eup %2184  ;;  %v935_v39 = vsel %vm923_vm1, %v904_v38, %v906_v35  ;;  %1052 = vst.msk [vmem:[#allocation5 + $0x58] sm:$0xff] %vm923_vm1, %v906_v35  ;;  %v910_v3 = vpop.permute.xlu1 %909  ;;  %2196 = vpow2.f32 %v1171_v63  ;;  %v1185_v22 = vmul.f32 1.442695, %v3599_v29  ;;  %v1138_v38 = vld [vmem:[#allocation3 + $0x8] sm:$0xff] }
 0x37c   : > { %v2187_v51 = vpop.eup %2186  ;;  %1433 = vadd.xlane.f32.xlu1 %v1432_v1  ;;  %v1429_v55 = vadd.f32 %v2185_v17, %v2183_v60  ;;  %1016 = vst [vmem:[%s3032_s4 + $0x320] sm:$0xff] %v935_v39  ;;  %1053 = vst.msk [vmem:[#allocation5 + $0x60] sm:$0xff] %vm923_vm1, %v910_v3  ;;  %2198 = vpow2.f32 %v1175_v49  ;;  %v3604_v60 = vld [vmem:[#allocation30_spill] sm:$0xff] }
 0x37d   : > { %v2189_v45 = vpop.eup %2188 }
 0x37e   : > { %v2191_v40 = vpop.eup %2190  ;;  %1430 = vadd.xlane.f32.xlu0 %v1429_v55  ;;  %v1438_v43 = vadd.f32 %v2189_v45, %v2187_v51  ;;  %v908_v47 = vpop.permute.xlu0 %907  ;;  %v1139_v51 = vld [vmem:[#allocation3 + $0x10] sm:$0xff]  ;;  %v3607_v45 = vld [vmem:[#allocation36_spill] sm:$0xff] }
 0x37f   : > { %v2193_v28 = vpop.eup %2192  ;;  %v936_v32 = vsel %vm923_vm1, %v908_v47, %v910_v3  ;;  %v984_v57 = vsel %vm923_vm1, %v823_v16, %v908_v47  ;;  %v912_v13 = vpop.permute.xlu1 %911  ;;  %v3603_v16 = vld [vmem:[#allocation27_spill] sm:$0xff]  ;;  %v3606_v55 = vld [vmem:[#allocation33_spill] sm:$0xff] }
 0x380   : > { %1439 = vadd.xlane.f32.xlu1 %v1438_v43  ;;  %v1435_v25 = vadd.f32 %v2193_v28, %v2191_v40  ;;  %1017 = vst [vmem:[%s3032_s4 + $0x360] sm:$0xff] %v984_v57  ;;  %1018 = vst [vmem:[%s3032_s4 + $0x368] sm:$0xff] %v936_v32  ;;  %v985_v37 = vsel %vm923_vm1, %v824_v36, %v912_v13  ;;  %v3605_v1 = vsub.f32 %v3603_v16, %v3604_v60  ;;  %v1142_v32 = vld [vmem:[#allocation3 + $0x28] sm:$0xff]  ;;  %v3609_v57 = vld [vmem:[#allocation31_spill] sm:$0xff] }
 0x381   : > { %1019 = vst [vmem:[%s3032_s4 + $0x3a8] sm:$0xff] %v985_v37  ;;  %v3608_v36 = vsub.f32 %v3606_v55, %v3607_v45  ;;  %v1149_v55 = vld [vmem:[#allocation3 + $0x60] sm:$0xff] }
 0x382   : > { %1436 = vadd.xlane.f32.xlu0 %v1435_v25  ;;  %v914_v42 = vpop.permute.xlu0 %913  ;;  %v1189_v35 = vmul.f32 1.442695, %v3605_v1 }
 0x383   : > { %v937_v4 = vsel %vm923_vm1, %v912_v13, %v914_v42  ;;  %1054 = vst.msk [vmem:[#allocation5 + $0x68] sm:$0xff] %vm923_vm1, %v914_v42  ;;  %v916_v11 = vpop.permute.xlu1 %915  ;;  %v1195_v40 = vmul.f32 1.442695, %v3608_v36  ;;  %v3610_v13 = vld [vmem:[#allocation34_spill] sm:$0xff] }
 0x384   : > { %1020 = vst [vmem:[%s3032_s4 + $0x3b0] sm:$0xff] %v937_v4  ;;  %v986_v8 = vsel %vm923_vm1, %v825_v7, %v916_v11  ;;  %v3611_v25 = vsub.f32 %v3609_v57, %v3610_v13 }
 0x385   : > { %1021 = vst [vmem:[%s3032_s4 + $0x3f0] sm:$0xff] %v986_v8  ;;  %v2195_v6 = vpop.eup %2194  ;;  %v1141_v8 = vld [vmem:[#allocation3 + $0x20] sm:$0xff] }
 0x386   : > { %v918_v34 = vpop.permute.xlu0 %917  ;;  %v1201_v31 = vmul.f32 %v2195_v6, %v1137_v14  ;;  %v1193_v37 = vmul.f32 1.442695, %v3611_v25  ;;  %v1143_v14 = vld [vmem:[#allocation3 + $0x30] sm:$0xff] }
 0x387   : > { %v938_v52 = vsel %vm923_vm1, %v916_v11, %v918_v34  ;;  %1055 = vst.msk [vmem:[#allocation5 + $0x70] sm:$0xff] %vm923_vm1, %v918_v34  ;;  %v3612_v34 = vld [vmem:[#allocation37_spill] sm:$0xff] }
 0x388   : > { %1022 = vst [vmem:[%s3032_s4 + $0x3f8] sm:$0xff] %v938_v52  ;;  %v2197_v18 = vpop.eup %2196  ;;  %v3613_v52 = vld [vmem:[#allocation39_spill] sm:$0xff]  ;;  %v1151_v25 = vld [vmem:[#allocation3 + $0x70] sm:$0xff] }
 0x389   : > { %v2199_v9 = vpop.eup %2198  ;;  %v3614_v26 = vsub.f32 %v3612_v34, %v3613_v52  ;;  %v826_v34 = vld [vmem:[#allocation5 + $0x78] sm:$0xff] }
 0x38a   : > { %v1204_v43 = vmul.f32 %v2199_v9, %v1140_v12 }
 0x38b   : > { %v1199_v56 = vmul.f32 1.442695, %v3614_v26 }
 0x391   : > { %919 = vrot.lane.b32.xlu1 %v2863_v33, %s2482_s10  ;;  %v3590_v33 = vsub.f32 %v3054_v0, %v3064_v54  ;;  %v3594_v0 = vsub.f32 %v3095_v19, %v3108_v20  ;;  %v3602_v19 = vsub.f32 %v3600_v23, %v3601_v5  ;;  %v1148_v23 = vld [vmem:[#allocation3 + $0x58] sm:$0xff] }
 0x393   : > { %v1173_v48 = vmul.f32 1.442695, %v3590_v33  ;;  %v1181_v54 = vmul.f32 1.442695, %v3594_v0  ;;  %v1191_v20 = vmul.f32 1.442695, %v3602_v19 }
 0x394   : > { %v1144_v33 = vld [vmem:[#allocation3 + $0x38] sm:$0xff] }
 0x395   : > { %2200 = vpow2.f32 %v1173_v48  ;;  %v3615_v48 = vld [vmem:[#allocation35_spill] sm:$0xff] }
 0x398   : > { %921 = vrot.lane.b32.xlu0 %v2867_v41, %s2482_s10  ;;  %v3591_v41 = vsub.f32 %v3085_v10, %v3103_v15  ;;  %v3595_v10 = vld [vmem:[#allocation28_spill] sm:$0xff] }
 0x399   : > { %v3596_v15 = vsub.f32 %v3125_v53, %v3595_v10  ;;  %v1202_v53 = vmul.f32 %v2197_v18, %v1138_v38 }
 0x39a   : > { %v1179_v24 = vmul.f32 1.442695, %v3591_v41  ;;  %v3616_v41 = vld [vmem:[#allocation38_spill] sm:$0xff] }
 0x39b   : > { %v1187_v27 = vmul.f32 1.442695, %v3596_v15 }
 0x39c   : > { %2202 = vpow2.f32 %v1179_v24  ;;  %v3617_v24 = vsub.f32 %v3615_v48, %v3616_v41 }
 0x39d   : > { %2204 = vpow2.f32 %v1177_v50 }
 0x39e   : > { %2206 = vpow2.f32 %v1183_v61  ;;  %v1197_v46 = vmul.f32 1.442695, %v3617_v24 }
 0x39f   : > { %2208 = vpow2.f32 %v1181_v54 }
 0x3a0   : > { %2210 = vpow2.f32 %v1187_v27  ;;  %v1146_v27 = vld [vmem:[#allocation3 + $0x48] sm:$0xff] }
 0x3a1   : > { %2212 = vpow2.f32 %v1185_v22 }
 0x3a2   : > { %v2201_v39 = vpop.eup %2200  ;;  %2214 = vpow2.f32 %v1191_v20 }
 0x3a3   : > { %2216 = vpow2.f32 %v1189_v35  ;;  %v1203_v42 = vmul.f32 %v2201_v39, %v1139_v51  ;;  %v1150_v35 = vld [vmem:[#allocation3 + $0x68] sm:$0xff] }
 0x3a4   : > { %2218 = vpow2.f32 %v1195_v40 }
 0x3a5   : > { %2220 = vpow2.f32 %v1193_v37 }
 0x3a6   : > { %2222 = vpow2.f32 %v1199_v56 }
 0x3a7   : > { %2224 = vpow2.f32 %v1197_v46 }
 0x3a9   : > { %v2203_v47 = vpop.eup %2202 }
 0x3aa   : > { %v2205_v4 = vpop.eup %2204  ;;  %v1206_v63 = vmul.f32 %v2203_v47, %v1142_v32  ;;  %v1152_v47 = vld [vmem:[#allocation3 + $0x78] sm:$0xff] }
 0x3ab   : > { %v2207_v44 = vpop.eup %2206  ;;  %v1205_v58 = vmul.f32 %v2205_v4, %v1141_v8 }
 0x3ac   : > { %v2209_v61 = vpop.eup %2208  ;;  %v1208_v54 = vmul.f32 %v2207_v44, %v1144_v33 }
 0x3ad   : > { %v2211_v10 = vpop.eup %2210 }
 0x3ae   : > { %v2213_v18 = vpop.eup %2212  ;;  %v1210_v22 = vmul.f32 %v2211_v10, %v1146_v27 }
 0x3af   : > { %v1209_v19 = vmul.f32 %v2213_v18, %v1145_v2 }
 0x3e9   : > { %v1395_v62 = vpop.xlane.xlu1 %1394 }
 0x3ea   : > { %v1441_v30 = vadd.f32 %v1395_v62, %v1201_v31  ;;  %v1207_v62 = vmul.f32 %v2209_v61, %v1143_v14 }
 0x3ec   : > { %1457 = vst.msk [vmem:[#allocation3] sm:$0xff] %vm923_vm1, %v1441_v30  ;;  %v2215_v30 = vpop.eup %2214 }
 0x3ed   : > { %v2217_v20 = vpop.eup %2216  ;;  %v1212_v16 = vmul.f32 %v2215_v30, %v1148_v23 }
 0x3ee   : > { %v1398_v17 = vpop.xlane.xlu0 %1397  ;;  %v2219_v60 = vpop.eup %2218 }
 0x3ef   : > { %v1442_v3 = vadd.f32 %v1398_v17, %v1202_v53  ;;  %v1147_v53 = vld [vmem:[#allocation3 + $0x50] sm:$0xff]  ;;  %v1214_v36 = vmul.f32 %v2219_v60, %v1150_v35 }
 0x3f0   : > { %v1211_v39 = vmul.f32 %v2217_v20, %v1147_v53 }
 0x3f1   : > { %1458 = vst.msk [vmem:[#allocation3 + $0x8] sm:$0xff] %vm923_vm1, %v1442_v3  ;;  %v1404_v28 = vpop.xlane.xlu1 %1403  ;;  %v2221_v3 = vpop.eup %2220 }
 0x3f2   : > { %v1444_v7 = vadd.f32 %v1404_v28, %v1204_v43  ;;  %v2223_v40 = vpop.eup %2222  ;;  %v1213_v32 = vmul.f32 %v2221_v3, %v1149_v55 }
 0x3f3   : > { %v1401_v11 = vpop.xlane.xlu0 %1400  ;;  %v2225_v57 = vpop.eup %2224 }
 0x3f4   : > { %1460 = vst.msk [vmem:[#allocation3 + $0x18] sm:$0xff] %vm923_vm1, %v1444_v7  ;;  %v1443_v59 = vadd.f32 %v1401_v11, %v1203_v42  ;;  %v1216_v7 = vmul.f32 %v2223_v40, %v1152_v47  ;;  %v1215_v11 = vmul.f32 %v2225_v57, %v1151_v25 }
 0x3f5   : > { %v1410_v49 = vpop.xlane.xlu1 %1409 }
 0x3f6   : > { %1459 = vst.msk [vmem:[#allocation3 + $0x10] sm:$0xff] %vm923_vm1, %v1443_v59  ;;  %v1446_v50 = vadd.f32 %v1410_v49, %v1206_v63 }
 0x3f7   : > { %v1407_v6 = vpop.xlane.xlu0 %1406 }
 0x3f8   : > { %1462 = vst.msk [vmem:[#allocation3 + $0x28] sm:$0xff] %vm923_vm1, %v1446_v50  ;;  %v1445_v0 = vadd.f32 %v1407_v6, %v1205_v58 }
 0x3f9   : > { %v1416_v15 = vpop.xlane.xlu1 %1415 }
 0x3fa   : > { %1461 = vst.msk [vmem:[#allocation3 + $0x20] sm:$0xff] %vm923_vm1, %v1445_v0  ;;  %v1448_v31 = vadd.f32 %v1416_v15, %v1208_v54 }
 0x3fb   : > { %v1413_v21 = vpop.xlane.xlu0 %1412 }
 0x3fc   : > { %1464 = vst.msk [vmem:[#allocation3 + $0x38] sm:$0xff] %vm923_vm1, %v1448_v31  ;;  %v1447_v29 = vadd.f32 %v1413_v21, %v1207_v62 }
 0x3fd   : > { %v1422_v38 = vpop.xlane.xlu1 %1421 }
 0x3fe   : > { %1463 = vst.msk [vmem:[#allocation3 + $0x30] sm:$0xff] %vm923_vm1, %v1447_v29  ;;  %v1450_v5 = vadd.f32 %v1422_v38, %v1210_v22 }
 0x3ff   : > { %v1419_v9 = vpop.xlane.xlu0 %1418 }
 0x400   : > { %1466 = vst.msk [vmem:[#allocation3 + $0x48] sm:$0xff] %vm923_vm1, %v1450_v5  ;;  %v1449_v12 = vadd.f32 %v1419_v9, %v1209_v19 }
 0x401   : > { %v1428_v1 = vpop.xlane.xlu1 %1427 }
 0x402   : > { %1465 = vst.msk [vmem:[#allocation3 + $0x40] sm:$0xff] %vm923_vm1, %v1449_v12  ;;  %v1452_v17 = vadd.f32 %v1428_v1, %v1212_v16 }
 0x403   : > { %v1425_v51 = vpop.xlane.xlu0 %1424 }
 0x404   : > { %1468 = vst.msk [vmem:[#allocation3 + $0x58] sm:$0xff] %vm923_vm1, %v1452_v17  ;;  %v1451_v45 = vadd.f32 %v1425_v51, %v1211_v39 }
 0x405   : > { %v1434_v43 = vpop.xlane.xlu1 %1433 }
 0x406   : > { %1467 = vst.msk [vmem:[#allocation3 + $0x50] sm:$0xff] %vm923_vm1, %v1451_v45  ;;  %v1454_v28 = vadd.f32 %v1434_v43, %v1214_v36 }
 0x407   : > { %v1431_v13 = vpop.xlane.xlu0 %1430 }
 0x408   : > { %1470 = vst.msk [vmem:[#allocation3 + $0x68] sm:$0xff] %vm923_vm1, %v1454_v28  ;;  %v1453_v37 = vadd.f32 %v1431_v13, %v1213_v32 }
 0x409   : > { %v1440_v42 = vpop.xlane.xlu1 %1439 }
 0x40a   : > { %1469 = vst.msk [vmem:[#allocation3 + $0x60] sm:$0xff] %vm923_vm1, %v1453_v37  ;;  %v1456_v4 = vadd.f32 %v1440_v42, %v1216_v7 }
 0x40b   : > { %v1437_v8 = vpop.xlane.xlu0 %1436 }
 0x40c   : > { %1472 = vst.msk [vmem:[#allocation3 + $0x78] sm:$0xff] %vm923_vm1, %v1456_v4  ;;  %v1455_v52 = vadd.f32 %v1437_v8, %v1215_v11 }
 0x40d   : > { %v920_v26 = vpop.permute.xlu1 %919  ;;  %1492 = sbr.rel (%p1902_p0) target bundleno = 1304 (0x518), region = 52 }
 0x40e   : > { %1471 = vst.msk [vmem:[#allocation3 + $0x70] sm:$0xff] %vm923_vm1, %v1455_v52  ;;  %v987_v56 = vsel %vm923_vm1, %v826_v34, %v920_v26 }
 0x40f   : > { %1023 = vst [vmem:[%s3032_s4 + $0x438] sm:$0xff] %v987_v56  ;;  %v922_v59 = vpop.permute.xlu0 %921 }
 0x410   : > { %v939_v63 = vsel %vm923_vm1, %v920_v26, %v922_v59  ;;  %1056 = vst.msk [vmem:[#allocation5 + $0x78] sm:$0xff] %vm923_vm1, %v922_v59 }
 0x411   : > { %1024 = vst [vmem:[%s3032_s4 + $0x440] sm:$0xff] %v939_v63 }
 0x412   : > { %v1493_v44 = vld [vmem:[#allocation5] sm:$0xff]  ;;  %v1494_v49 = vld [vmem:[#allocation5 + $0x8] sm:$0xff]  ;;  %v1495_v33 = vld [vmem:[#allocation5 + $0x10] sm:$0xff] }
 0x413   : > { %v1496_v48 = vld [vmem:[#allocation5 + $0x18] sm:$0xff]  ;;  %v1497_v41 = vld [vmem:[#allocation5 + $0x20] sm:$0xff]  ;;  %v1498_v24 = vld [vmem:[#allocation5 + $0x28] sm:$0xff]  ;;  %1509 = vst.msk [vmem:[%s2749_s30 + $0x40] sm:$0xff] %vm923_vm1, %v1493_v44 }
 0x414   : > { %1510 = vst.msk [vmem:[%s2749_s30 + $0x88] sm:$0xff] %vm923_vm1, %v1494_v49  ;;  %1511 = vst.msk [vmem:[%s2749_s30 + $0xd0] sm:$0xff] %vm923_vm1, %v1495_v33  ;;  %v1499_v46 = vld [vmem:[#allocation5 + $0x30] sm:$0xff]  ;;  %v1500_v50 = vld [vmem:[#allocation5 + $0x38] sm:$0xff] }
 0x415   : > { %v1501_v58 = vld [vmem:[#allocation5 + $0x40] sm:$0xff]  ;;  %1512 = vst.msk [vmem:[%s2749_s30 + $0x118] sm:$0xff] %vm923_vm1, %v1496_v48  ;;  %1513 = vst.msk [vmem:[%s2749_s30 + $0x160] sm:$0xff] %vm923_vm1, %v1497_v41  ;;  %v1502_v61 = vld [vmem:[#allocation5 + $0x48] sm:$0xff] }
 0x416   : > { %1514 = vst.msk [vmem:[%s2749_s30 + $0x1a8] sm:$0xff] %vm923_vm1, %v1498_v24  ;;  %v1503_v6 = vld [vmem:[#allocation5 + $0x50] sm:$0xff]  ;;  %v1504_v14 = vld [vmem:[#allocation5 + $0x58] sm:$0xff]  ;;  %1515 = vst.msk [vmem:[%s2749_s30 + $0x1f0] sm:$0xff] %vm923_vm1, %v1499_v46 }
 0x417   : > { %1516 = vst.msk [vmem:[%s2749_s30 + $0x238] sm:$0xff] %vm923_vm1, %v1500_v50  ;;  %1517 = vst.msk [vmem:[%s2749_s30 + $0x280] sm:$0xff] %vm923_vm1, %v1501_v58  ;;  %v1505_v0 = vld [vmem:[#allocation5 + $0x60] sm:$0xff]  ;;  %v1506_v54 = vld [vmem:[#allocation5 + $0x68] sm:$0xff] }
 0x418   : > { %v1507_v10 = vld [vmem:[#allocation5 + $0x70] sm:$0xff]  ;;  %1518 = vst.msk [vmem:[%s2749_s30 + $0x2c8] sm:$0xff] %vm923_vm1, %v1502_v61  ;;  %1519 = vst.msk [vmem:[%s2749_s30 + $0x310] sm:$0xff] %vm923_vm1, %v1503_v6  ;;  %v1508_v15 = vld [vmem:[#allocation5 + $0x78] sm:$0xff] }
 0x419   : > { %1520 = vst.msk [vmem:[%s2749_s30 + $0x358] sm:$0xff] %vm923_vm1, %v1504_v14  ;;  %1521 = vst.msk [vmem:[%s2749_s30 + $0x3a0] sm:$0xff] %vm923_vm1, %v1505_v0  ;;  %v1541_v27 = vld [vmem:[#allocation3] sm:$0xff]  ;;  %v1542_v31 = vld [vmem:[#allocation3 + $0x8] sm:$0xff] }
 0x41a   : > { %1522 = vst.msk [vmem:[%s2749_s30 + $0x3e8] sm:$0xff] %vm923_vm1, %v1506_v54  ;;  %1523 = vst.msk [vmem:[%s2749_s30 + $0x430] sm:$0xff] %vm923_vm1, %v1507_v10  ;;  %v1543_v62 = vld [vmem:[#allocation3 + $0x10] sm:$0xff]  ;;  %v1544_v18 = vld [vmem:[#allocation3 + $0x18] sm:$0xff]  ;;  %2226 = vlog2.f32 %v1541_v27 }
 0x41b   : > { %1524 = vst.msk [vmem:[%s2749_s30 + $0x478] sm:$0xff] %vm923_vm1, %v1508_v15  ;;  %v1545_v21 = vld [vmem:[#allocation3 + $0x20] sm:$0xff]  ;;  %2228 = vlog2.f32 %v1542_v31  ;;  %v1546_v2 = vld [vmem:[#allocation3 + $0x28] sm:$0xff]  ;;  %v1547_v29 = vld [vmem:[#allocation3 + $0x30] sm:$0xff] }
 0x41c   : > { %2230 = vlog2.f32 %v1543_v62  ;;  %v1548_v22 = vld [vmem:[#allocation3 + $0x38] sm:$0xff]  ;;  %v1549_v30 = vld [vmem:[#allocation3 + $0x40] sm:$0xff]  ;;  %v1550_v38 = vld [vmem:[#allocation3 + $0x48] sm:$0xff] }
 0x41d   : > { %2232 = vlog2.f32 %v1544_v18  ;;  %v1551_v23 = vld [vmem:[#allocation3 + $0x50] sm:$0xff]  ;;  %v1552_v5 = vld [vmem:[#allocation3 + $0x58] sm:$0xff]  ;;  %v1553_v19 = vld [vmem:[#allocation3 + $0x60] sm:$0xff] }
 0x41e   : > { %2234 = vlog2.f32 %v1545_v21  ;;  %v1554_v20 = vld [vmem:[#allocation3 + $0x68] sm:$0xff]  ;;  %v1525_v53 = vld [vmem:[#allocation2] sm:$0xff]  ;;  %v1555_v60 = vld [vmem:[#allocation3 + $0x70] sm:$0xff] }
 0x41f   : > { %2236 = vlog2.f32 %v1546_v2  ;;  %v1526_v16 = vld [vmem:[#allocation2 + $0x8] sm:$0xff]  ;;  %v1527_v17 = vld [vmem:[#allocation2 + $0x10] sm:$0xff]  ;;  %v1605_v3 = vld [vmem:[#allocation4] sm:$0xff] }
 0x420   : > { %2238 = vlog2.f32 %v1547_v29  ;;  %v1528_v55 = vld [vmem:[#allocation2 + $0x18] sm:$0xff]  ;;  %v1606_v43 = vld [vmem:[#allocation4 + $0x8] sm:$0xff]  ;;  %v1529_v28 = vld [vmem:[#allocation2 + $0x20] sm:$0xff] }
 0x421   : > { %2240 = vlog2.f32 %v1548_v22  ;;  %v1556_v45 = vld [vmem:[#allocation3 + $0x78] sm:$0xff]  ;;  %v1607_v13 = vld [vmem:[#allocation4 + $0x10] sm:$0xff]  ;;  %v1530_v37 = vld [vmem:[#allocation2 + $0x28] sm:$0xff] }
 0x422   : > { %2242 = vlog2.f32 %v1549_v30  ;;  %v1608_v4 = vld [vmem:[#allocation4 + $0x18] sm:$0xff]  ;;  %v1531_v34 = vld [vmem:[#allocation2 + $0x30] sm:$0xff]  ;;  %v1609_v33 = vld [vmem:[#allocation4 + $0x20] sm:$0xff] }
 0x423   : > { %2244 = vlog2.f32 %v1550_v38  ;;  %v1532_v63 = vld [vmem:[#allocation2 + $0x38] sm:$0xff]  ;;  %v1533_v14 = vld [vmem:[#allocation2 + $0x40] sm:$0xff]  ;;  %v1610_v10 = vld [vmem:[#allocation4 + $0x28] sm:$0xff] }
 0x424   : > { %2246 = vlog2.f32 %v1551_v23  ;;  %v1611_v18 = vld [vmem:[#allocation4 + $0x30] sm:$0xff]  ;;  %v1534_v22 = vld [vmem:[#allocation2 + $0x48] sm:$0xff]  ;;  %v1612_v30 = vld [vmem:[#allocation4 + $0x38] sm:$0xff] }
 0x425   : > { %2248 = vlog2.f32 %v1552_v5 }
 0x426   : > { %2250 = vlog2.f32 %v1553_v19 }
 0x427   : > { %v2227_v9 = vpop.eup %2226  ;;  %2252 = vlog2.f32 %v1554_v20 }
 0x428   : > { %v2229_v12 = vpop.eup %2228  ;;  %v1558_v1 = vmul.f32 0.6931472, %v2227_v9  ;;  %2254 = vlog2.f32 %v1555_v60 }
 0x429   : > { %v2231_v35 = vpop.eup %2230  ;;  %v1560_v39 = vmul.f32 0.6931472, %v2229_v12  ;;  %2256 = vlog2.f32 %v1556_v45  ;;  %v1613_v12 = vld [vmem:[#allocation4 + $0x40] sm:$0xff] }
 0x42a   : > { %v2233_v51 = vpop.eup %2232  ;;  %v1562_v36 = vmul.f32 0.6931472, %v2231_v35  ;;  %v1589_v40 = vadd.f32 %v1558_v1, %v1525_v53  ;;  %v1535_v53 = vld [vmem:[#allocation2 + $0x50] sm:$0xff] }
 0x42b   : > { %v2235_v47 = vpop.eup %2234  ;;  %v1564_v32 = vmul.f32 0.6931472, %v2233_v51  ;;  %v1590_v57 = vadd.f32 %v1560_v39, %v1526_v16  ;;  %v1536_v51 = vld [vmem:[#allocation2 + $0x58] sm:$0xff] }
 0x42c   : > { %v2237_v25 = vpop.eup %2236  ;;  %v1566_v7 = vmul.f32 0.6931472, %v2235_v47  ;;  %v1591_v42 = vadd.f32 %v1562_v36, %v1527_v17  ;;  %v1621_v11 = vsub.f32 %v1589_v40, %v1605_v3 }
 0x42d   : > { %v2239_v8 = vpop.eup %2238  ;;  %v1568_v52 = vmul.f32 0.6931472, %v2237_v25  ;;  %v1592_v26 = vadd.f32 %v1564_v32, %v1528_v55  ;;  %v1622_v56 = vsub.f32 %v1590_v57, %v1606_v43  ;;  %v1614_v55 = vld [vmem:[#allocation4 + $0x48] sm:$0xff]  ;;  %v1537_v32 = vld [vmem:[#allocation2 + $0x60] sm:$0xff]  ;;  %v1615_v57 = vld [vmem:[#allocation4 + $0x50] sm:$0xff] }
 0x42e   : > { %v2241_v59 = vpop.eup %2240  ;;  %v1570_v44 = vmul.f32 0.6931472, %v2239_v8  ;;  %v1593_v49 = vadd.f32 %v1566_v7, %v1529_v28  ;;  %v1623_v48 = vsub.f32 %v1591_v42, %v1607_v13  ;;  %v1637_v41 = vsel %vm923_vm1, %v1621_v11, 0.0  ;;  %v1538_v8 = vld [vmem:[#allocation2 + $0x68] sm:$0xff] }
 0x42f   : > { %v2243_v24 = vpop.eup %2242  ;;  %v1572_v46 = vmul.f32 0.6931472, %v2241_v59  ;;  %v1594_v50 = vadd.f32 %v1568_v52, %v1530_v37  ;;  %v1624_v58 = vsub.f32 %v1592_v26, %v1608_v4  ;;  %v1638_v61 = vsel %vm923_vm1, %v1622_v56, 0.0 }
 0x430   : > { %v2245_v6 = vpop.eup %2244  ;;  %v1574_v0 = vmul.f32 0.6931472, %v2243_v24  ;;  %v1595_v54 = vadd.f32 %v1570_v44, %v1531_v34  ;;  %v1639_v15 = vadd.f32 %v1638_v61, %v1637_v41  ;;  %v1625_v21 = vsub.f32 %v1593_v49, %v1609_v33  ;;  %v1616_v34 = vld [vmem:[#allocation4 + $0x58] sm:$0xff]  ;;  %v1539_v44 = vld [vmem:[#allocation2 + $0x70] sm:$0xff]  ;;  %v1617_v49 = vld [vmem:[#allocation4 + $0x60] sm:$0xff] }
 0x431   : > { %v2247_v27 = vpop.eup %2246  ;;  %v1576_v31 = vmul.f32 0.6931472, %v2245_v6  ;;  %v1596_v62 = vadd.f32 %v1572_v46, %v1532_v63  ;;  %v1640_v2 = vsel %vm923_vm1, %v1623_v48, 0.0  ;;  %v1626_v19 = vsub.f32 %v1594_v50, %v1610_v10  ;;  %v1540_v50 = vld [vmem:[#allocation2 + $0x78] sm:$0xff] }
 0x432   : > { %v2249_v29 = vpop.eup %2248  ;;  %v1641_v38 = vadd.f32 %v1640_v2, %v1639_v15  ;;  %v1578_v23 = vmul.f32 0.6931472, %v2247_v27  ;;  %v1597_v5 = vadd.f32 %v1574_v0, %v1533_v14  ;;  %v1642_v20 = vsel %vm923_vm1, %v1624_v58, 0.0  ;;  %v1618_v58 = vld [vmem:[#allocation4 + $0x68] sm:$0xff] }
 0x433   : > { %v2251_v9 = vpop.eup %2250  ;;  %v1627_v16 = vsub.f32 %v1595_v54, %v1611_v18  ;;  %v1580_v1 = vmul.f32 0.6931472, %v2249_v29  ;;  %v1598_v35 = vadd.f32 %v1576_v31, %v1534_v22  ;;  %v1628_v17 = vsub.f32 %v1596_v62, %v1612_v30  ;;  %v1619_v54 = vld [vmem:[#allocation4 + $0x70] sm:$0xff]  ;;  %v1620_v62 = vld [vmem:[#allocation4 + $0x78] sm:$0xff] }
 0x434   : > { %v1643_v60 = vadd.f32 %v1642_v20, %v1641_v38  ;;  %v1644_v39 = vsel %vm923_vm1, %v1625_v21, 0.0  ;;  %v2253_v3 = vpop.eup %2252  ;;  %v1582_v36 = vmul.f32 0.6931472, %v2251_v9  ;;  %v1599_v40 = vadd.f32 %v1578_v23, %v1535_v53 }
 0x435   : > { %v1629_v43 = vsub.f32 %v1597_v5, %v1613_v12  ;;  %v1646_v47 = vsel %vm923_vm1, %v1626_v19, 0.0  ;;  %v2255_v28 = vpop.eup %2254  ;;  %v1648_v25 = vsel %vm923_vm1, %v1627_v16, 0.0  ;;  %v1584_v37 = vmul.f32 0.6931472, %v2253_v3 }
 0x436   : > { %v1645_v45 = vadd.f32 %v1644_v39, %v1643_v60  ;;  %v1600_v7 = vadd.f32 %v1580_v1, %v1536_v51  ;;  %v1630_v42 = vsub.f32 %v1598_v35, %v1614_v55  ;;  %v1650_v4 = vsel %vm923_vm1, %v1628_v17, 0.0  ;;  %v2257_v11 = vpop.eup %2256 }
 0x437   : > { %v1586_v26 = vmul.f32 0.6931472, %v2255_v28  ;;  %v1601_v56 = vadd.f32 %v1582_v36, %v1537_v32  ;;  %v1631_v59 = vsub.f32 %v1599_v40, %v1615_v57  ;;  %v1652_v63 = vsel %vm923_vm1, %v1629_v43, 0.0 }
 0x438   : > { %v1647_v13 = vadd.f32 %v1646_v47, %v1645_v45  ;;  %v1588_v48 = vmul.f32 0.6931472, %v2257_v11  ;;  %v1602_v41 = vadd.f32 %v1584_v37, %v1538_v8  ;;  %v1632_v24 = vsub.f32 %v1600_v7, %v1616_v34 }
 0x439   : > { %v1654_v46 = vsel %vm923_vm1, %v1630_v42, 0.0  ;;  %v1603_v6 = vadd.f32 %v1586_v26, %v1539_v44  ;;  %v1633_v14 = vsub.f32 %v1601_v56, %v1617_v49  ;;  %v1656_v0 = vsel %vm923_vm1, %v1631_v59, 0.0 }
 0x43a   : > { %v1649_v52 = vadd.f32 %v1648_v25, %v1647_v13  ;;  %v1604_v15 = vadd.f32 %v1588_v48, %v1540_v50  ;;  %v1634_v27 = vsub.f32 %v1602_v41, %v1618_v58  ;;  %v1658_v31 = vsel %vm923_vm1, %v1632_v24, 0.0 }
 0x43b   : > { %v1635_v21 = vsub.f32 %v1603_v6, %v1619_v54  ;;  %v1660_v2 = vsel %vm923_vm1, %v1633_v14, 0.0 }
 0x43c   : > { %v1651_v33 = vadd.f32 %v1650_v4, %v1649_v52  ;;  %v1636_v22 = vsub.f32 %v1604_v15, %v1620_v62  ;;  %v1662_v30 = vsel %vm923_vm1, %v1634_v27, 0.0 }
 0x43d   : > { %v1664_v23 = vsel %vm923_vm1, %v1635_v21, 0.0 }
 0x43e   : > { %v1653_v61 = vadd.f32 %v1652_v63, %v1651_v33  ;;  %v1666_v19 = vsel %vm923_vm1, %v1636_v22, 0.0 }
 0x440   : > { %v1655_v10 = vadd.f32 %v1654_v46, %v1653_v61 }
 0x442   : > { %v1657_v18 = vadd.f32 %v1656_v0, %v1655_v10 }
 0x444   : > { %v1659_v29 = vadd.f32 %v1658_v31, %v1657_v18 }
 0x446   : > { %v1661_v38 = vadd.f32 %v1660_v2, %v1659_v29 }
 0x448   : > { %v1663_v5 = vadd.f32 %v1662_v30, %v1661_v38 }
 0x44a   : > { %v1665_v20 = vadd.f32 %v1664_v23, %v1663_v5 }
 0x44c   : > { %v1667_v9 = vadd.f32 %v1666_v19, %v1665_v20 }
 0x44e   : > { %1668 = vadd.xlane.f32.xlu0 %v1667_v9 }
 0x4d7   : > { %v1669_v53 = vpop.xlane.xlu0 %1668 }
 0x4d8   : > { %v1670_v12 = vrot.slane %v1669_v53, 4 }
 0x4da   : > { %v1671_v16 = vadd.f32 %v1670_v12, %v1669_v53 }
 0x4dc   : > { %v1672_v60 = vrot.slane %v1671_v16, 2 }
 0x4de   : > { %v1673_v1 = vadd.f32 %v1672_v60, %v1671_v16 }
 0x4e0   : > { %v1674_v35 = vrot.slane %v1673_v1, 1 }
 0x4e2   : > { %v1675_v17 = vadd.f32 %v1674_v35, %v1673_v1 }
 0x4e4   : > { %1966 = vpush %v1675_v17 }
 0x515   : > { %s1967_s9 = spop %1966 }
 0x516   : > { %v1677_v39 = vstv %s1967_s9 }
 0x517   : > { %1678 = vst [vmem:[%s2871_s28] sm:$0xff] %v1677_v39 }
 0x518 PF: > { %s3618_s1 = sld [smem:[#allocation19_spill]]  ;;  %s1703_s14 = sshll.u32 %s2871_s28, 4  ;;  %s1704_s14 = int_to_ptr.vmem [resolvable:$true] %s1703_s14 }
 0x519   : > { %s3619_s21 = sld [smem:[#allocation22_spill]]  ;;  %s1686_s27 = scalar_lea.sflag [#allocation8], %s2718_s22 }
 0x51a   : > { %s3620_s7 = sld [smem:[#allocation42_spill]]  ;;  %s2342_s5 = scalar_lea.vmem %s1704_s14, 128 }
 0x51b   : > { %p2343_p11 = scmp.ne.s32.totalorder %s1704_s14, %s2342_s5  ;;  %s2483_s30 = smov [#allocation12]  }
 0x51c   : > { %s2346_s12 = sshll.u32 %s2483_s30, 4  ;;  %s2347_s12 = int_to_ptr.vmem [resolvable:$false] %s2346_s12 }
 0x51d   : > { %s2348_s10 = scalar_lea.vmem %s2347_s12, 256  ;;  %p2349_p9 = scmp.lt.s32.totalorder %s1704_s14, %s2347_s12 }
 0x51e   : > { %s1904_s11 = sshll.u32 %s3618_s1, 7  ;;  %p2350_p12 = scmp.lt.s32.totalorder %s2348_s10, %s2342_s5 }
 0x51f   : > { %p3621_p6 = scmp.ne.s32.totalorder %s3619_s21, 0 }
 0x520   : > { %s1701_s15 = scalar_lea.hbm %s3620_s7, %s1904_s11  ;;  %p2351_p7 = por %p2350_p12, %p2349_p9 }
 0x521   : > { %p2344_p5 = pnand %p2343_p11, %p3621_p6 }
 0x523   : > { %p2345_p1 = pneg %p2344_p5 }
 0x525   : > { %p2352_p3 = pnand %p2351_p7, %p2345_p1 }
 0x527   : > { %2355 = shalt.err (!%p2352_p3)
}
 0x528   : > { %s2356_s29 = scalar_lea.hbm %s1701_s15, 128  ;;  %s2360_s6 = scalar_lea.hbm %s3620_s7, 256 }
 0x529   : > { %p2357_p2 = scmp.ne.s32.totalorder %s1701_s15, %s2356_s29  ;;  %p2361_p8 = scmp.lt.s32.totalorder %s1701_s15, %s3620_s7 }
 0x52a   : > { %p2362_p10 = scmp.lt.s32.totalorder %s2360_s6, %s2356_s29 }
 0x52b   : > { %p2358_p13 = pnand %p2357_p2, %p3621_p6 }
 0x52c   : > { %p2363_p0 = por %p2362_p10, %p2361_p8 }
 0x52d   : > { %p2359_p4 = pneg %p2358_p13 }
 0x52f   : > { %p2364_p11 = pnand %p2363_p0, %p2359_p4 }
 0x531   : > { %2367 = shalt.err (!%p2364_p11)
}
 0x532   : > { %1974 = dma.vmem_to_hbm [thread:$0]  (%p3621_p6), %s1704_s14, 128, %s1701_s15, %s1686_s27  }
 0x533 PF: > { %s3622_s4 = sld [smem:[#allocation17_spill]]  ;;  %p1991_p5 = scmp.ge.s32.totalorder %s2470_s25, 2 }
 0x534   : > { %s3623_s9 = sld [smem:[#allocation24_spill]] }
 0x539   : > { %s1724_s1 = sand.u32 1, %s3622_s4  }
 0x53a   : > { %p3624_p1 = scmp.ne.s32.totalorder %s3623_s9, 0  ;;  %s1725_s11 = scalar_lea.sflag [#allocation8], %s1724_s1 }
 0x53c   : > { %p1987_p9 = pnand %p1991_p5, %p3624_p1 }
 0x53e   : > { %p1988_p12 = pneg %p1987_p9 }
 0x540   : > { %2425 = dma.done.wait (%p1988_p12), %s1725_s11, 128  }
 0x541   : > { %2427 = vsyncadd (%p1988_p12), %s1725_s11, 4294967168  ;;  %s24_s25 = sadd.s32 1, %s2470_s25   ;;  %s3625_s21 = sld [smem:[#allocation23_spill]] }
 0x542   : > { %p21_p7 = scmp.ge.s32.totalorder %s24_s25, 10   ;;  %s3626_s26 = sld [smem:[#allocation20_spill]] }
 0x543   : > { %s3627_s8 = sld [smem:[#allocation21_spill]]  ;;  %s3628_s15 = smov %s2434_s16 }
 0x544   : > { %s3629_s16 = smov %s2438_s17  ;;  %s3630_s17 = smov %s2687_s3 }
 0x545   : > { %s3631_s18 = smov %s2446_s19  ;;  %s3632_s19 = smov %s2450_s20 }
 0x546   : > { %s3635_s22 = smov %s2466_s24  ;;  %23 = sbr.rel (!%p21_p7) target bundleno = 15 (0xf), region = 122 }
 0x547   : > { %s3633_s20 = smov %s3625_s21  ;;  %s3634_s21 = smov %s2462_s23 }
 0x548   : > { %s3636_s23 = smov %s3626_s26 }
 0x549   : > { %s3637_s24 = smov %s3627_s8 }
 0x54b   :  { %1730 = vsyncpa [#allocation7], 1 }
 0x54c   :  { %1732 = vsyncpa [#allocation7 + $0x1], 1 }
 0x54d   :  { %1733 = vsyncpa [#allocation10], 1 }
 0x54e   :  { %1735 = vsyncpa [#allocation10 + $0x1], 1 }
 0x54f   :  { %1736 = vsyncpa [#allocation8], 1 }
 0x550   :  { %1738 = vsyncpa [#allocation8 + $0x1], 1 }

</bundles_post_ra>
